<compile_context>
chip_gen: v5e
topology: v5e:2x2
jax: 0.10.0
libtpu: 0.0.40
codegen_flags: <defaults>
</compile_context>

<pallas_src>
import functools

import jax
import jax.numpy as jnp
from jax.experimental import pallas as pl
from jax.experimental.pallas import tpu as pltpu

LANE = 128
OUT_PAD = 128  # lane-dense padded width for the 3-wide output projection


def _round_up(n, m=LANE):
    return ((n + m - 1) // m) * m


# ----------------------------------------------------------------------------
# Fused Pallas kernel: conv(x) + conv(x_mod) -> fc1 -> fc2 -> out
# ----------------------------------------------------------------------------
def _fused_kernel(clp, biop,
                  xin_ref,
                  wc1_ref, bc1_ref, wc2_ref, bc2_ref,
                  wf1a_ref, wf1b_ref, wf1c_ref, bf1_ref,
                  wf2_ref, bf2_ref, wo_ref, bo_ref,
                  out_ref):
    f32 = jnp.float32
    bf16 = jnp.bfloat16

    # Single fused input slab [x | x_mod | bio]; static 128-aligned slices.
    xin = xin_ref[...]                               # (tb, 2*clp + biop), bf16
    x = xin[:, 0:clp]
    xm = xin[:, clp:2 * clp]
    bio = xin[:, 2 * clp:2 * clp + biop]

    # Conv1d's as Toeplitz-weight matmuls + bias + ReLU.  Output columns are
    # already in torch's channel-major flatten order (f*conv_len + t).
    h1 = jnp.dot(x, wc1_ref[...], preferred_element_type=f32) + bc1_ref[...]
    h1 = jnp.maximum(h1, 0.0).astype(bf16)
    h2 = jnp.dot(xm, wc2_ref[...], preferred_element_type=f32) + bc2_ref[...]
    h2 = jnp.maximum(h2, 0.0).astype(bf16)

    # fc1 with the [h1 | h2 | bio] concat folded into three weight blocks.
    a = (jnp.dot(h1, wf1a_ref[...], preferred_element_type=f32)
         + jnp.dot(h2, wf1b_ref[...], preferred_element_type=f32)
         + jnp.dot(bio, wf1c_ref[...], preferred_element_type=f32)
         + bf1_ref[...])
    a = jnp.maximum(a, 0.0).astype(bf16)

    # fc2 -> ReLU
    a = jnp.dot(a, wf2_ref[...], preferred_element_type=f32) + bf2_ref[...]
    a = jnp.maximum(a, 0.0).astype(bf16)

    # out projection (zero-padded to OUT_PAD lanes for a full-lane store)
    out_ref[...] = jnp.dot(a, wo_ref[...], preferred_element_type=f32) + bo_ref[...]


# ----------------------------------------------------------------------------
# One-time weight preparation (pure layout reorder of torch parameters)
# ----------------------------------------------------------------------------
def _conv_to_toeplitz(w, length):
    """w: (F, C, fs) torch Conv1d weight -> (C*L, F*T) banded matmul weight.

    W_big[c*L + l, f*T + t] = w[f, c, l - t] for t <= l < t+fs, else 0, so
    x.reshape(B, C*L) @ W_big reproduces Conv1d in channel-major flat order.
    """
    fn_, C, fs = w.shape
    T = length - fs + 1
    l_idx = jnp.arange(length)[:, None]          # (L, 1)
    t_idx = jnp.arange(T)[None, :]               # (1, T)
    k = l_idx - t_idx                            # (L, T)
    valid = (k >= 0) & (k < fs)
    kc = jnp.clip(k, 0, fs - 1)
    g = w[:, :, kc]                              # (F, C, L, T)
    g = jnp.where(valid[None, None], g, 0.0)
    return g.transpose(1, 2, 0, 3).reshape(C * length, fn_ * T)


def prepare_params(params, *, length, filter_size):
    """Torch-layout params -> lane-padded bf16 matmul-layout params."""
    fn_, C, fs = params["conv_w"].shape
    assert fs == filter_size
    T = length - fs + 1
    flat_dim = fn_ * T
    node1 = params["fc1_w"].shape[0]
    node2 = params["fc2_w"].shape[0]          # TODO(synk): node2==0 (fc2=None) path not handled
    bio_num = params["fc1_w"].shape[1] - 2 * flat_dim

    clp = _round_up(C * length)
    flatp = _round_up(flat_dim)
    biop = _round_up(bio_num)
    n1p = _round_up(node1)
    n2p = _round_up(node2)

    bf16 = jnp.bfloat16
    f32 = jnp.float32

    def pad2(a, rows, cols):
        return jnp.pad(a, ((0, rows - a.shape[0]), (0, cols - a.shape[1])))

    p = {}
    # Conv Toeplitz weights (bf16) + per-position biases (f32, added post-accum).
    p["wc1"] = pad2(_conv_to_toeplitz(params["conv_w"], length), clp, flatp).astype(bf16)
    p["wc2"] = pad2(_conv_to_toeplitz(params["conv_mod_w"], length), clp, flatp).astype(bf16)
    p["bc1"] = pad2(jnp.repeat(params["conv_b"], T).reshape(1, flat_dim), 1, flatp).astype(f32)
    p["bc2"] = pad2(jnp.repeat(params["conv_mod_b"], T).reshape(1, flat_dim), 1, flatp).astype(f32)

    # fc1 split into [h1 | h2 | bio] column blocks.
    fc1_w = params["fc1_w"]                                           # (node1, total_in)
    p["wf1a"] = pad2(fc1_w[:, :flat_dim].T, flatp, n1p).astype(bf16)
    p["wf1b"] = pad2(fc1_w[:, flat_dim:2 * flat_dim].T, flatp, n1p).astype(bf16)
    p["wf1c"] = pad2(fc1_w[:, 2 * flat_dim:].T, biop, n1p).astype(bf16)
    p["bf1"] = pad2(params["fc1_b"].reshape(1, node1), 1, n1p).astype(f32)

    p["wf2"] = pad2(params["fc2_w"].T, n1p, n2p).astype(bf16)
    p["bf2"] = pad2(params["fc2_b"].reshape(1, node2), 1, n2p).astype(f32)

    p["wo"] = pad2(params["out_w"].T, n2p, OUT_PAD).astype(bf16)
    p["bo"] = pad2(params["out_b"].reshape(1, -1), 1, OUT_PAD).astype(f32)

    p["_dims"] = {"clp": clp, "biop": biop}
    return p


_WEIGHT_KEYS = ("wc1", "bc1", "wc2", "bc2",
                "wf1a", "wf1b", "wf1c", "bf1",
                "wf2", "bf2", "wo", "bo")


# ----------------------------------------------------------------------------
# Forward
# ----------------------------------------------------------------------------
def deep_pe_forward(x, x_mod, bio, prepped, *, row_tile=256):
    """Forward pass equivalent to DeepPEModel.forward in eval mode."""
    B, C, L = x.shape
    CL = C * L
    bio_num = bio.shape[1]
    clp = prepped["_dims"]["clp"]
    biop = prepped["_dims"]["biop"]

    bf16 = jnp.bfloat16
    # One lane-padded bf16 input slab -> a single input DMA per grid step.
    xf = jnp.pad(x.reshape(B, CL).astype(bf16), ((0, 0), (0, clp - CL)))
    xmf = jnp.pad(x_mod.reshape(B, CL).astype(bf16), ((0, 0), (0, clp - CL)))
    biof = jnp.pad(bio.astype(bf16), ((0, 0), (0, biop - bio_num)))
    xin = jnp.concatenate([xf, xmf, biof], axis=1)       # (B, 2*clp + biop)
    wtot = xin.shape[1]

    tb = min(B, row_tile)
    grid = (pl.cdiv(B, tb),)

    weights = [prepped[k] for k in _WEIGHT_KEYS]

    # Scoped VMEM: resident single-buffered weights + double-buffered IO tiles.
    weight_bytes = sum(int(w.size) * w.dtype.itemsize for w in weights)
    io_bytes = 2 * (tb * wtot * 2 + tb * OUT_PAD * 4)
    vmem_limit = int(1.25 * (weight_bytes + io_bytes)) + (8 << 20)
    vmem_limit = max(32 << 20, min(vmem_limit, 112 << 20))

    kernel = functools.partial(_fused_kernel, clp, biop)

    def run(buffered_weights):
        if buffered_weights:
            def weight_spec(a):
                # Full array, VMEM-resident across all batch steps, single-buffered.
                return pl.BlockSpec(a.shape, lambda i: (0, 0),
                                    pipeline_mode=pl.Buffered(1))
        else:
            def weight_spec(a):
                return pl.BlockSpec(a.shape, lambda i: (0, 0))

        return pl.pallas_call(
            kernel,
            out_shape=jax.ShapeDtypeStruct((B, OUT_PAD), jnp.float32),
            grid_spec=pltpu.PrefetchScalarGridSpec(
                num_scalar_prefetch=0,
                grid=grid,
                in_specs=[pl.BlockSpec((tb, wtot), lambda i: (i, 0))]
                         + [weight_spec(w) for w in weights],
                out_specs=pl.BlockSpec((tb, OUT_PAD), lambda i: (i, 0)),
            ),
            compiler_params=pltpu.CompilerParams(
                dimension_semantics=("parallel",),
                vmem_limit_bytes=vmem_limit),
        )(xin, *weights)

    try:
        out_padded = run(buffered_weights=True)
    except Exception:
        # Fallback for jax versions that reject pipeline_mode / Buffered(1);
        # identical math, just default-double-buffered weights.
        out_padded = run(buffered_weights=False)

    return out_padded[:, :3]


# ----------------------------------------------------------------------------
# Pure-JAX f32 reference (same math, no Pallas) for a sanity check.
# ----------------------------------------------------------------------------
def deep_pe_reference(x, x_mod, bio, params, *, filter_size):
    B, C, L = x.shape
    fs = filter_size
    conv_len = L - fs + 1
    fn_ = params["conv_w"].shape[0]

    def conv1d(inp, w, b):  # inp (B,C,L), w (F,C,fs)
        cols = jnp.stack([inp[:, :, k:k + conv_len] for k in range(fs)], axis=-1)
        return jnp.einsum("bctk,fck->bft", cols, w) + b[None, :, None]

    h1 = jax.nn.relu(conv1d(x, params["conv_w"], params["conv_b"]))
    h2 = jax.nn.relu(conv1d(x_mod, params["conv_mod_w"], params["conv_mod_b"]))
    h1 = h1.reshape(B, fn_ * conv_len)
    h2 = h2.reshape(B, fn_ * conv_len)
    h = jnp.concatenate([h1, h2, bio], axis=1)
    h = jax.nn.relu(h @ params["fc1_w"].T + params["fc1_b"])
    h = jax.nn.relu(h @ params["fc2_w"].T + params["fc2_b"])
    return h @ params["out_w"].T + params["out_b"]


# ----------------------------------------------------------------------------
# Main
# ----------------------------------------------------------------------------
if __name__ == "__main__":
    # Small shapes consistent with DeepPEModel(filter_size, filter_num, ...)
    B = 2
    C = 4            # one-hot DNA channels (Conv1d in_channels=4)
    L = 24           # sequence length (torch default is 99)
    filter_size = 5
    filter_num = 8
    conv_len = L - filter_size + 1        # 20
    bio_num = 20
    node1, node2 = 32, 16
    flat_dim = conv_len * filter_num      # 160
    total_in = flat_dim * 2 + bio_num     # 340

    key = jax.random.PRNGKey(0)
    ks = jax.random.split(key, 16)

    # Deterministic synthetic parameters (torch layouts).
    params = {
        "conv_w":     0.1 * jax.random.normal(ks[0], (filter_num, C, filter_size), jnp.float32),
        "conv_b":     0.1 * jax.random.normal(ks[1], (filter_num,), jnp.float32),
        "conv_mod_w": 0.1 * jax.random.normal(ks[2], (filter_num, C, filter_size), jnp.float32),
        "conv_mod_b": 0.1 * jax.random.normal(ks[3], (filter_num,), jnp.float32),
        "fc1_w":      0.1 * jax.random.normal(ks[4], (node1, total_in), jnp.float32),
        "fc1_b":      0.1 * jax.random.normal(ks[5], (node1,), jnp.float32),
        "fc2_w":      0.1 * jax.random.normal(ks[6], (node2, node1), jnp.float32),
        "fc2_b":      0.1 * jax.random.normal(ks[7], (node2,), jnp.float32),
        "out_w":      0.1 * jax.random.normal(ks[8], (3, node2), jnp.float32),
        "out_b":      0.1 * jax.random.normal(ks[9], (3,), jnp.float32),
    }

    # Inputs (NCL for the sequences, (B, bio_num) for the bio features).
    x = jax.random.normal(ks[10], (B, C, L), jnp.float32)
    x_mod = jax.random.normal(ks[11], (B, C, L), jnp.float32)
    bio = jax.random.normal(ks[12], (B, bio_num), jnp.float32)

    # One-time weight layout prep (Toeplitz conv weights, fc1 column split,
    # lane padding to 128 multiples, bf16 weight cast).
    prepped = prepare_params(params, length=L, filter_size=filter_size)

    out = deep_pe_forward(x, x_mod, bio, prepped)
    out = jax.block_until_ready(out)

    ref = deep_pe_reference(x, x_mod, bio, params, filter_size=filter_size)
    ref = jax.block_until_ready(ref)

    assert out.shape == (B, 3), out.shape
    # bf16 matmul operands with f32 accumulation: ~1e-3 abs error at these scales.
    assert jnp.allclose(out, ref, rtol=2e-2, atol=2e-2), (out, ref)

    print("KERNEL_OK")
</pallas_src>

<mosaic_0001>
module attributes {stable_mosaic.version = 11 : i64} {
  func.func @_fused_kernel(%arg0: i32, %arg1: memref<2x384xbf16, #tpu.memory_space<vmem>>, %arg2: memref<128x256xbf16, #tpu.memory_space<vmem>>, %arg3: memref<1x256xf32, #tpu.memory_space<vmem>>, %arg4: memref<128x256xbf16, #tpu.memory_space<vmem>>, %arg5: memref<1x256xf32, #tpu.memory_space<vmem>>, %arg6: memref<256x128xbf16, #tpu.memory_space<vmem>>, %arg7: memref<256x128xbf16, #tpu.memory_space<vmem>>, %arg8: memref<128x128xbf16, #tpu.memory_space<vmem>>, %arg9: memref<1x128xf32, #tpu.memory_space<vmem>>, %arg10: memref<128x128xbf16, #tpu.memory_space<vmem>>, %arg11: memref<1x128xf32, #tpu.memory_space<vmem>>, %arg12: memref<128x128xbf16, #tpu.memory_space<vmem>>, %arg13: memref<1x128xf32, #tpu.memory_space<vmem>>, %arg14: memref<2x128xf32, #tpu.memory_space<vmem>>) attributes {dimension_semantics = [#tpu.dimension_semantics<parallel>], iteration_bounds = array<i64: 1>, scalar_prefetch = 0 : i64, scratch_operands = 0 : i64, tpu.core_type = #tpu.core_type<tc>, window_params = [{transform_indices = @transform_0, window_bounds = array<i64: 2, 384>}, {pipeline_mode = #tpu.pipeline_mode<synchronous>, transform_indices = @transform_1, window_bounds = array<i64: 128, 256>}, {pipeline_mode = #tpu.pipeline_mode<synchronous>, transform_indices = @transform_2, window_bounds = array<i64: 1, 256>}, {pipeline_mode = #tpu.pipeline_mode<synchronous>, transform_indices = @transform_3, window_bounds = array<i64: 128, 256>}, {pipeline_mode = #tpu.pipeline_mode<synchronous>, transform_indices = @transform_4, window_bounds = array<i64: 1, 256>}, {pipeline_mode = #tpu.pipeline_mode<synchronous>, transform_indices = @transform_5, window_bounds = array<i64: 256, 128>}, {pipeline_mode = #tpu.pipeline_mode<synchronous>, transform_indices = @transform_6, window_bounds = array<i64: 256, 128>}, {pipeline_mode = #tpu.pipeline_mode<synchronous>, transform_indices = @transform_7, window_bounds = array<i64: 128, 128>}, {pipeline_mode = #tpu.pipeline_mode<synchronous>, transform_indices = @transform_8, window_bounds = array<i64: 1, 128>}, {pipeline_mode = #tpu.pipeline_mode<synchronous>, transform_indices = @transform_9, window_bounds = array<i64: 128, 128>}, {pipeline_mode = #tpu.pipeline_mode<synchronous>, transform_indices = @transform_10, window_bounds = array<i64: 1, 128>}, {pipeline_mode = #tpu.pipeline_mode<synchronous>, transform_indices = @transform_11, window_bounds = array<i64: 128, 128>}, {pipeline_mode = #tpu.pipeline_mode<synchronous>, transform_indices = @transform_12, window_bounds = array<i64: 1, 128>}, {transform_indices = @transform_13, window_bounds = array<i64: 2, 128>}]} {
    %c0 = arith.constant 0 : index
    %c0_0 = arith.constant 0 : index
    %0 = vector.load %arg1[%c0, %c0_0] : memref<2x384xbf16, #tpu.memory_space<vmem>>, vector<2x384xbf16>
    %1 = vector.extract_strided_slice %0 {offsets = [0, 0], sizes = [2, 128], strides = [1, 1]} : vector<2x384xbf16> to vector<2x128xbf16>
    %2 = vector.extract_strided_slice %0 {offsets = [0, 128], sizes = [2, 128], strides = [1, 1]} : vector<2x384xbf16> to vector<2x128xbf16>
    %3 = vector.extract_strided_slice %0 {offsets = [0, 256], sizes = [2, 128], strides = [1, 1]} : vector<2x384xbf16> to vector<2x128xbf16>
    %c0_1 = arith.constant 0 : index
    %c0_2 = arith.constant 0 : index
    %4 = vector.load %arg2[%c0_1, %c0_2] : memref<128x256xbf16, #tpu.memory_space<vmem>>, vector<128x256xbf16>
    %cst = arith.constant dense<0.000000e+00> : vector<2x256xf32>
    %5 = tpu.matmul %1, %4, %cst {dimension_numbers = #tpu.dot_dimension_numbers<[1], [0], [0], [1], [0, 0, 1, 1], [], []>} : vector<2x128xbf16>, vector<128x256xbf16>, vector<2x256xf32> -> vector<2x256xf32>
    %c0_3 = arith.constant 0 : index
    %c0_4 = arith.constant 0 : index
    %6 = vector.load %arg3[%c0_3, %c0_4] : memref<1x256xf32, #tpu.memory_space<vmem>>, vector<1x256xf32>
    %7 = vector.broadcast %6 : vector<1x256xf32> to vector<2x256xf32>
    %8 = arith.addf %5, %7 : vector<2x256xf32>
    %cst_5 = arith.constant 0.000000e+00 : f32
    %9 = vector.broadcast %cst_5 : f32 to vector<2x256xf32>
    %10 = arith.maximumf %8, %9 : vector<2x256xf32>
    %11 = arith.truncf %10 : vector<2x256xf32> to vector<2x256xbf16>
    %c0_6 = arith.constant 0 : index
    %c0_7 = arith.constant 0 : index
    %12 = vector.load %arg4[%c0_6, %c0_7] : memref<128x256xbf16, #tpu.memory_space<vmem>>, vector<128x256xbf16>
    %cst_8 = arith.constant dense<0.000000e+00> : vector<2x256xf32>
    %13 = tpu.matmul %2, %12, %cst_8 {dimension_numbers = #tpu.dot_dimension_numbers<[1], [0], [0], [1], [0, 0, 1, 1], [], []>} : vector<2x128xbf16>, vector<128x256xbf16>, vector<2x256xf32> -> vector<2x256xf32>
    %c0_9 = arith.constant 0 : index
    %c0_10 = arith.constant 0 : index
    %14 = vector.load %arg5[%c0_9, %c0_10] : memref<1x256xf32, #tpu.memory_space<vmem>>, vector<1x256xf32>
    %15 = vector.broadcast %14 : vector<1x256xf32> to vector<2x256xf32>
    %16 = arith.addf %13, %15 : vector<2x256xf32>
    %cst_11 = arith.constant 0.000000e+00 : f32
    %17 = vector.broadcast %cst_11 : f32 to vector<2x256xf32>
    %18 = arith.maximumf %16, %17 : vector<2x256xf32>
    %19 = arith.truncf %18 : vector<2x256xf32> to vector<2x256xbf16>
    %c0_12 = arith.constant 0 : index
    %c0_13 = arith.constant 0 : index
    %20 = vector.load %arg6[%c0_12, %c0_13] : memref<256x128xbf16, #tpu.memory_space<vmem>>, vector<256x128xbf16>
    %cst_14 = arith.constant dense<0.000000e+00> : vector<2x128xf32>
    %21 = tpu.matmul %11, %20, %cst_14 {dimension_numbers = #tpu.dot_dimension_numbers<[1], [0], [0], [1], [0, 0, 1, 1], [], []>} : vector<2x256xbf16>, vector<256x128xbf16>, vector<2x128xf32> -> vector<2x128xf32>
    %c0_15 = arith.constant 0 : index
    %c0_16 = arith.constant 0 : index
    %22 = vector.load %arg7[%c0_15, %c0_16] : memref<256x128xbf16, #tpu.memory_space<vmem>>, vector<256x128xbf16>
    %cst_17 = arith.constant dense<0.000000e+00> : vector<2x128xf32>
    %23 = tpu.matmul %19, %22, %cst_17 {dimension_numbers = #tpu.dot_dimension_numbers<[1], [0], [0], [1], [0, 0, 1, 1], [], []>} : vector<2x256xbf16>, vector<256x128xbf16>, vector<2x128xf32> -> vector<2x128xf32>
    %24 = arith.addf %21, %23 : vector<2x128xf32>
    %c0_18 = arith.constant 0 : index
    %c0_19 = arith.constant 0 : index
    %25 = vector.load %arg8[%c0_18, %c0_19] : memref<128x128xbf16, #tpu.memory_space<vmem>>, vector<128x128xbf16>
    %cst_20 = arith.constant dense<0.000000e+00> : vector<2x128xf32>
    %26 = tpu.matmul %3, %25, %cst_20 {dimension_numbers = #tpu.dot_dimension_numbers<[1], [0], [0], [1], [0, 0, 1, 1], [], []>} : vector<2x128xbf16>, vector<128x128xbf16>, vector<2x128xf32> -> vector<2x128xf32>
    %27 = arith.addf %24, %26 : vector<2x128xf32>
    %c0_21 = arith.constant 0 : index
    %c0_22 = arith.constant 0 : index
    %28 = vector.load %arg9[%c0_21, %c0_22] : memref<1x128xf32, #tpu.memory_space<vmem>>, vector<1x128xf32>
    %29 = vector.broadcast %28 : vector<1x128xf32> to vector<2x128xf32>
    %30 = arith.addf %27, %29 : vector<2x128xf32>
    %cst_23 = arith.constant 0.000000e+00 : f32
    %31 = vector.broadcast %cst_23 : f32 to vector<2x128xf32>
    %32 = arith.maximumf %30, %31 : vector<2x128xf32>
    %33 = arith.truncf %32 : vector<2x128xf32> to vector<2x128xbf16>
    %c0_24 = arith.constant 0 : index
    %c0_25 = arith.constant 0 : index
    %34 = vector.load %arg10[%c0_24, %c0_25] : memref<128x128xbf16, #tpu.memory_space<vmem>>, vector<128x128xbf16>
    %cst_26 = arith.constant dense<0.000000e+00> : vector<2x128xf32>
    %35 = tpu.matmul %33, %34, %cst_26 {dimension_numbers = #tpu.dot_dimension_numbers<[1], [0], [0], [1], [0, 0, 1, 1], [], []>} : vector<2x128xbf16>, vector<128x128xbf16>, vector<2x128xf32> -> vector<2x128xf32>
    %c0_27 = arith.constant 0 : index
    %c0_28 = arith.constant 0 : index
    %36 = vector.load %arg11[%c0_27, %c0_28] : memref<1x128xf32, #tpu.memory_space<vmem>>, vector<1x128xf32>
    %37 = vector.broadcast %36 : vector<1x128xf32> to vector<2x128xf32>
    %38 = arith.addf %35, %37 : vector<2x128xf32>
    %cst_29 = arith.constant 0.000000e+00 : f32
    %39 = vector.broadcast %cst_29 : f32 to vector<2x128xf32>
    %40 = arith.maximumf %38, %39 : vector<2x128xf32>
    %41 = arith.truncf %40 : vector<2x128xf32> to vector<2x128xbf16>
    %c0_30 = arith.constant 0 : index
    %c0_31 = arith.constant 0 : index
    %42 = vector.load %arg12[%c0_30, %c0_31] : memref<128x128xbf16, #tpu.memory_space<vmem>>, vector<128x128xbf16>
    %cst_32 = arith.constant dense<0.000000e+00> : vector<2x128xf32>
    %43 = tpu.matmul %41, %42, %cst_32 {dimension_numbers = #tpu.dot_dimension_numbers<[1], [0], [0], [1], [0, 0, 1, 1], [], []>} : vector<2x128xbf16>, vector<128x128xbf16>, vector<2x128xf32> -> vector<2x128xf32>
    %c0_33 = arith.constant 0 : index
    %c0_34 = arith.constant 0 : index
    %44 = vector.load %arg13[%c0_33, %c0_34] : memref<1x128xf32, #tpu.memory_space<vmem>>, vector<1x128xf32>
    %45 = vector.broadcast %44 : vector<1x128xf32> to vector<2x128xf32>
    %46 = arith.addf %43, %45 : vector<2x128xf32>
    %c0_35 = arith.constant 0 : index
    %c0_36 = arith.constant 0 : index
    %47 = vector.load %arg14[%c0_35, %c0_36] : memref<2x128xf32, #tpu.memory_space<vmem>>, vector<2x128xf32>
    tpu.vector_store %arg14[%c0_35, %c0_36], %46 {strides = array<i32>} : memref<2x128xf32, #tpu.memory_space<vmem>>, vector<2x128xf32>,
    return
  }
  func.func @transform_0(%arg0: i32) -> (i32, i32) {
    %c0_i32 = arith.constant 0 : i32
    %c0_i32_0 = arith.constant 0 : i32
    return %arg0, %c0_i32 : i32, i32
  }
  func.func @transform_1(%arg0: i32) -> (i32, i32) {
    %c0_i32 = arith.constant 0 : i32
    %c0_i32_0 = arith.constant 0 : i32
    %c0_i32_1 = arith.constant 0 : i32
    return %c0_i32, %c0_i32_0 : i32, i32
  }
  func.func @transform_2(%arg0: i32) -> (i32, i32) {
    %c0_i32 = arith.constant 0 : i32
    %c0_i32_0 = arith.constant 0 : i32
    %c0_i32_1 = arith.constant 0 : i32
    return %c0_i32, %c0_i32_0 : i32, i32
  }
  func.func @transform_3(%arg0: i32) -> (i32, i32) {
    %c0_i32 = arith.constant 0 : i32
    %c0_i32_0 = arith.constant 0 : i32
    %c0_i32_1 = arith.constant 0 : i32
    return %c0_i32, %c0_i32_0 : i32, i32
  }
  func.func @transform_4(%arg0: i32) -> (i32, i32) {
    %c0_i32 = arith.constant 0 : i32
    %c0_i32_0 = arith.constant 0 : i32
    %c0_i32_1 = arith.constant 0 : i32
    return %c0_i32, %c0_i32_0 : i32, i32
  }
  func.func @transform_5(%arg0: i32) -> (i32, i32) {
    %c0_i32 = arith.constant 0 : i32
    %c0_i32_0 = arith.constant 0 : i32
    %c0_i32_1 = arith.constant 0 : i32
    return %c0_i32, %c0_i32_0 : i32, i32
  }
  func.func @transform_6(%arg0: i32) -> (i32, i32) {
    %c0_i32 = arith.constant 0 : i32
    %c0_i32_0 = arith.constant 0 : i32
    %c0_i32_1 = arith.constant 0 : i32
    return %c0_i32, %c0_i32_0 : i32, i32
  }
  func.func @transform_7(%arg0: i32) -> (i32, i32) {
    %c0_i32 = arith.constant 0 : i32
    %c0_i32_0 = arith.constant 0 : i32
    %c0_i32_1 = arith.constant 0 : i32
    return %c0_i32, %c0_i32_0 : i32, i32
  }
  func.func @transform_8(%arg0: i32) -> (i32, i32) {
    %c0_i32 = arith.constant 0 : i32
    %c0_i32_0 = arith.constant 0 : i32
    %c0_i32_1 = arith.constant 0 : i32
    return %c0_i32, %c0_i32_0 : i32, i32
  }
  func.func @transform_9(%arg0: i32) -> (i32, i32) {
    %c0_i32 = arith.constant 0 : i32
    %c0_i32_0 = arith.constant 0 : i32
    %c0_i32_1 = arith.constant 0 : i32
    return %c0_i32, %c0_i32_0 : i32, i32
  }
  func.func @transform_10(%arg0: i32) -> (i32, i32) {
    %c0_i32 = arith.constant 0 : i32
    %c0_i32_0 = arith.constant 0 : i32
    %c0_i32_1 = arith.constant 0 : i32
    return %c0_i32, %c0_i32_0 : i32, i32
  }
  func.func @transform_11(%arg0: i32) -> (i32, i32) {
    %c0_i32 = arith.constant 0 : i32
    %c0_i32_0 = arith.constant 0 : i32
    %c0_i32_1 = arith.constant 0 : i32
    return %c0_i32, %c0_i32_0 : i32, i32
  }
  func.func @transform_12(%arg0: i32) -> (i32, i32) {
    %c0_i32 = arith.constant 0 : i32
    %c0_i32_0 = arith.constant 0 : i32
    %c0_i32_1 = arith.constant 0 : i32
    return %c0_i32, %c0_i32_0 : i32, i32
  }
  func.func @transform_13(%arg0: i32) -> (i32, i32) {
    %c0_i32 = arith.constant 0 : i32
    %c0_i32_0 = arith.constant 0 : i32
    return %arg0, %c0_i32 : i32, i32
  }
}

module attributes {stable_mosaic.version = 11 : i64} {
  func.func @_fused_kernel(%arg0: i32, %arg1: memref<2x384xbf16, #tpu.memory_space<vmem>>, %arg2: memref<128x256xbf16, #tpu.memory_space<vmem>>, %arg3: memref<1x256xf32, #tpu.memory_space<vmem>>, %arg4: memref<128x256xbf16, #tpu.memory_space<vmem>>, %arg5: memref<1x256xf32, #tpu.memory_space<vmem>>, %arg6: memref<256x128xbf16, #tpu.memory_space<vmem>>, %arg7: memref<256x128xbf16, #tpu.memory_space<vmem>>, %arg8: memref<128x128xbf16, #tpu.memory_space<vmem>>, %arg9: memref<1x128xf32, #tpu.memory_space<vmem>>, %arg10: memref<128x128xbf16, #tpu.memory_space<vmem>>, %arg11: memref<1x128xf32, #tpu.memory_space<vmem>>, %arg12: memref<128x128xbf16, #tpu.memory_space<vmem>>, %arg13: memref<1x128xf32, #tpu.memory_space<vmem>>, %arg14: memref<2x128xf32, #tpu.memory_space<vmem>>) attributes {dimension_semantics = [#tpu.dimension_semantics<parallel>], iteration_bounds = array<i64: 1>, scalar_prefetch = 0 : i64, scratch_operands = 0 : i64, tpu.core_type = #tpu.core_type<tc>, window_params = [{transform_indices = @transform_0, window_bounds = array<i64: 2, 384>}, {pipeline_mode = #tpu.pipeline_mode<synchronous>, transform_indices = @transform_1, window_bounds = array<i64: 128, 256>}, {pipeline_mode = #tpu.pipeline_mode<synchronous>, transform_indices = @transform_2, window_bounds = array<i64: 1, 256>}, {pipeline_mode = #tpu.pipeline_mode<synchronous>, transform_indices = @transform_3, window_bounds = array<i64: 128, 256>}, {pipeline_mode = #tpu.pipeline_mode<synchronous>, transform_indices = @transform_4, window_bounds = array<i64: 1, 256>}, {pipeline_mode = #tpu.pipeline_mode<synchronous>, transform_indices = @transform_5, window_bounds = array<i64: 256, 128>}, {pipeline_mode = #tpu.pipeline_mode<synchronous>, transform_indices = @transform_6, window_bounds = array<i64: 256, 128>}, {pipeline_mode = #tpu.pipeline_mode<synchronous>, transform_indices = @transform_7, window_bounds = array<i64: 128, 128>}, {pipeline_mode = #tpu.pipeline_mode<synchronous>, transform_indices = @transform_8, window_bounds = array<i64: 1, 128>}, {pipeline_mode = #tpu.pipeline_mode<synchronous>, transform_indices = @transform_9, window_bounds = array<i64: 128, 128>}, {pipeline_mode = #tpu.pipeline_mode<synchronous>, transform_indices = @transform_10, window_bounds = array<i64: 1, 128>}, {pipeline_mode = #tpu.pipeline_mode<synchronous>, transform_indices = @transform_11, window_bounds = array<i64: 128, 128>}, {pipeline_mode = #tpu.pipeline_mode<synchronous>, transform_indices = @transform_12, window_bounds = array<i64: 1, 128>}, {transform_indices = @transform_13, window_bounds = array<i64: 2, 128>}]} {
    %c0 = arith.constant 0 : index
    %c0_0 = arith.constant 0 : index
    %0 = vector.load %arg1[%c0, %c0_0] : memref<2x384xbf16, #tpu.memory_space<vmem>>, vector<2x384xbf16>
    %1 = vector.extract_strided_slice %0 {offsets = [0, 0], sizes = [2, 128], strides = [1, 1]} : vector<2x384xbf16> to vector<2x128xbf16>
    %2 = vector.extract_strided_slice %0 {offsets = [0, 128], sizes = [2, 128], strides = [1, 1]} : vector<2x384xbf16> to vector<2x128xbf16>
    %3 = vector.extract_strided_slice %0 {offsets = [0, 256], sizes = [2, 128], strides = [1, 1]} : vector<2x384xbf16> to vector<2x128xbf16>
    %c0_1 = arith.constant 0 : index
    %c0_2 = arith.constant 0 : index
    %4 = vector.load %arg2[%c0_1, %c0_2] : memref<128x256xbf16, #tpu.memory_space<vmem>>, vector<128x256xbf16>
    %cst = arith.constant dense<0.000000e+00> : vector<2x256xf32>
    %5 = tpu.matmul %1, %4, %cst {dimension_numbers = #tpu.dot_dimension_numbers<[1], [0], [0], [1], [0, 0, 1, 1], [], []>} : vector<2x128xbf16>, vector<128x256xbf16>, vector<2x256xf32> -> vector<2x256xf32>
    %c0_3 = arith.constant 0 : index
    %c0_4 = arith.constant 0 : index
    %6 = vector.load %arg3[%c0_3, %c0_4] : memref<1x256xf32, #tpu.memory_space<vmem>>, vector<1x256xf32>
    %7 = vector.broadcast %6 : vector<1x256xf32> to vector<2x256xf32>
    %8 = arith.addf %5, %7 : vector<2x256xf32>
    %cst_5 = arith.constant 0.000000e+00 : f32
    %9 = vector.broadcast %cst_5 : f32 to vector<2x256xf32>
    %10 = arith.maximumf %8, %9 : vector<2x256xf32>
    %11 = arith.truncf %10 : vector<2x256xf32> to vector<2x256xbf16>
    %c0_6 = arith.constant 0 : index
    %c0_7 = arith.constant 0 : index
    %12 = vector.load %arg4[%c0_6, %c0_7] : memref<128x256xbf16, #tpu.memory_space<vmem>>, vector<128x256xbf16>
    %cst_8 = arith.constant dense<0.000000e+00> : vector<2x256xf32>
    %13 = tpu.matmul %2, %12, %cst_8 {dimension_numbers = #tpu.dot_dimension_numbers<[1], [0], [0], [1], [0, 0, 1, 1], [], []>} : vector<2x128xbf16>, vector<128x256xbf16>, vector<2x256xf32> -> vector<2x256xf32>
    %c0_9 = arith.constant 0 : index
    %c0_10 = arith.constant 0 : index
    %14 = vector.load %arg5[%c0_9, %c0_10] : memref<1x256xf32, #tpu.memory_space<vmem>>, vector<1x256xf32>
    %15 = vector.broadcast %14 : vector<1x256xf32> to vector<2x256xf32>
    %16 = arith.addf %13, %15 : vector<2x256xf32>
    %cst_11 = arith.constant 0.000000e+00 : f32
    %17 = vector.broadcast %cst_11 : f32 to vector<2x256xf32>
    %18 = arith.maximumf %16, %17 : vector<2x256xf32>
    %19 = arith.truncf %18 : vector<2x256xf32> to vector<2x256xbf16>
    %c0_12 = arith.constant 0 : index
    %c0_13 = arith.constant 0 : index
    %20 = vector.load %arg6[%c0_12, %c0_13] : memref<256x128xbf16, #tpu.memory_space<vmem>>, vector<256x128xbf16>
    %cst_14 = arith.constant dense<0.000000e+00> : vector<2x128xf32>
    %21 = tpu.matmul %11, %20, %cst_14 {dimension_numbers = #tpu.dot_dimension_numbers<[1], [0], [0], [1], [0, 0, 1, 1], [], []>} : vector<2x256xbf16>, vector<256x128xbf16>, vector<2x128xf32> -> vector<2x128xf32>
    %c0_15 = arith.constant 0 : index
    %c0_16 = arith.constant 0 : index
    %22 = vector.load %arg7[%c0_15, %c0_16] : memref<256x128xbf16, #tpu.memory_space<vmem>>, vector<256x128xbf16>
    %cst_17 = arith.constant dense<0.000000e+00> : vector<2x128xf32>
    %23 = tpu.matmul %19, %22, %cst_17 {dimension_numbers = #tpu.dot_dimension_numbers<[1], [0], [0], [1], [0, 0, 1, 1], [], []>} : vector<2x256xbf16>, vector<256x128xbf16>, vector<2x128xf32> -> vector<2x128xf32>
    %24 = arith.addf %21, %23 : vector<2x128xf32>
    %c0_18 = arith.constant 0 : index
    %c0_19 = arith.constant 0 : index
    %25 = vector.load %arg8[%c0_18, %c0_19] : memref<128x128xbf16, #tpu.memory_space<vmem>>, vector<128x128xbf16>
    %cst_20 = arith.constant dense<0.000000e+00> : vector<2x128xf32>
    %26 = tpu.matmul %3, %25, %cst_20 {dimension_numbers = #tpu.dot_dimension_numbers<[1], [0], [0], [1], [0, 0, 1, 1], [], []>} : vector<2x128xbf16>, vector<128x128xbf16>, vector<2x128xf32> -> vector<2x128xf32>
    %27 = arith.addf %24, %26 : vector<2x128xf32>
    %c0_21 = arith.constant 0 : index
    %c0_22 = arith.constant 0 : index
    %28 = vector.load %arg9[%c0_21, %c0_22] : memref<1x128xf32, #tpu.memory_space<vmem>>, vector<1x128xf32>
    %29 = vector.broadcast %28 : vector<1x128xf32> to vector<2x128xf32>
    %30 = arith.addf %27, %29 : vector<2x128xf32>
    %cst_23 = arith.constant 0.000000e+00 : f32
    %31 = vector.broadcast %cst_23 : f32 to vector<2x128xf32>
    %32 = arith.maximumf %30, %31 : vector<2x128xf32>
    %33 = arith.truncf %32 : vector<2x128xf32> to vector<2x128xbf16>
    %c0_24 = arith.constant 0 : index
    %c0_25 = arith.constant 0 : index
    %34 = vector.load %arg10[%c0_24, %c0_25] : memref<128x128xbf16, #tpu.memory_space<vmem>>, vector<128x128xbf16>
    %cst_26 = arith.constant dense<0.000000e+00> : vector<2x128xf32>
    %35 = tpu.matmul %33, %34, %cst_26 {dimension_numbers = #tpu.dot_dimension_numbers<[1], [0], [0], [1], [0, 0, 1, 1], [], []>} : vector<2x128xbf16>, vector<128x128xbf16>, vector<2x128xf32> -> vector<2x128xf32>
    %c0_27 = arith.constant 0 : index
    %c0_28 = arith.constant 0 : index
    %36 = vector.load %arg11[%c0_27, %c0_28] : memref<1x128xf32, #tpu.memory_space<vmem>>, vector<1x128xf32>
    %37 = vector.broadcast %36 : vector<1x128xf32> to vector<2x128xf32>
    %38 = arith.addf %35, %37 : vector<2x128xf32>
    %cst_29 = arith.constant 0.000000e+00 : f32
    %39 = vector.broadcast %cst_29 : f32 to vector<2x128xf32>
    %40 = arith.maximumf %38, %39 : vector<2x128xf32>
    %41 = arith.truncf %40 : vector<2x128xf32> to vector<2x128xbf16>
    %c0_30 = arith.constant 0 : index
    %c0_31 = arith.constant 0 : index
    %42 = vector.load %arg12[%c0_30, %c0_31] : memref<128x128xbf16, #tpu.memory_space<vmem>>, vector<128x128xbf16>
    %cst_32 = arith.constant dense<0.000000e+00> : vector<2x128xf32>
    %43 = tpu.matmul %41, %42, %cst_32 {dimension_numbers = #tpu.dot_dimension_numbers<[1], [0], [0], [1], [0, 0, 1, 1], [], []>} : vector<2x128xbf16>, vector<128x128xbf16>, vector<2x128xf32> -> vector<2x128xf32>
    %c0_33 = arith.constant 0 : index
    %c0_34 = arith.constant 0 : index
    %44 = vector.load %arg13[%c0_33, %c0_34] : memref<1x128xf32, #tpu.memory_space<vmem>>, vector<1x128xf32>
    %45 = vector.broadcast %44 : vector<1x128xf32> to vector<2x128xf32>
    %46 = arith.addf %43, %45 : vector<2x128xf32>
    %c0_35 = arith.constant 0 : index
    %c0_36 = arith.constant 0 : index
    %47 = vector.load %arg14[%c0_35, %c0_36] : memref<2x128xf32, #tpu.memory_space<vmem>>, vector<2x128xf32>
    tpu.vector_store %arg14[%c0_35, %c0_36], %46 {strides = array<i32>} : memref<2x128xf32, #tpu.memory_space<vmem>>, vector<2x128xf32>,
    return
  }
  func.func @transform_0(%arg0: i32) -> (i32, i32) {
    %c0_i32 = arith.constant 0 : i32
    %c0_i32_0 = arith.constant 0 : i32
    return %arg0, %c0_i32 : i32, i32
  }
  func.func @transform_1(%arg0: i32) -> (i32, i32) {
    %c0_i32 = arith.constant 0 : i32
    %c0_i32_0 = arith.constant 0 : i32
    %c0_i32_1 = arith.constant 0 : i32
    return %c0_i32, %c0_i32_0 : i32, i32
  }
  func.func @transform_2(%arg0: i32) -> (i32, i32) {
    %c0_i32 = arith.constant 0 : i32
    %c0_i32_0 = arith.constant 0 : i32
    %c0_i32_1 = arith.constant 0 : i32
    return %c0_i32, %c0_i32_0 : i32, i32
  }
  func.func @transform_3(%arg0: i32) -> (i32, i32) {
    %c0_i32 = arith.constant 0 : i32
    %c0_i32_0 = arith.constant 0 : i32
    %c0_i32_1 = arith.constant 0 : i32
    return %c0_i32, %c0_i32_0 : i32, i32
  }
  func.func @transform_4(%arg0: i32) -> (i32, i32) {
    %c0_i32 = arith.constant 0 : i32
    %c0_i32_0 = arith.constant 0 : i32
    %c0_i32_1 = arith.constant 0 : i32
    return %c0_i32, %c0_i32_0 : i32, i32
  }
  func.func @transform_5(%arg0: i32) -> (i32, i32) {
    %c0_i32 = arith.constant 0 : i32
    %c0_i32_0 = arith.constant 0 : i32
    %c0_i32_1 = arith.constant 0 : i32
    return %c0_i32, %c0_i32_0 : i32, i32
  }
  func.func @transform_6(%arg0: i32) -> (i32, i32) {
    %c0_i32 = arith.constant 0 : i32
    %c0_i32_0 = arith.constant 0 : i32
    %c0_i32_1 = arith.constant 0 : i32
    return %c0_i32, %c0_i32_0 : i32, i32
  }
  func.func @transform_7(%arg0: i32) -> (i32, i32) {
    %c0_i32 = arith.constant 0 : i32
    %c0_i32_0 = arith.constant 0 : i32
    %c0_i32_1 = arith.constant 0 : i32
    return %c0_i32, %c0_i32_0 : i32, i32
  }
  func.func @transform_8(%arg0: i32) -> (i32, i32) {
    %c0_i32 = arith.constant 0 : i32
    %c0_i32_0 = arith.constant 0 : i32
    %c0_i32_1 = arith.constant 0 : i32
    return %c0_i32, %c0_i32_0 : i32, i32
  }
  func.func @transform_9(%arg0: i32) -> (i32, i32) {
    %c0_i32 = arith.constant 0 : i32
    %c0_i32_0 = arith.constant 0 : i32
    %c0_i32_1 = arith.constant 0 : i32
    return %c0_i32, %c0_i32_0 : i32, i32
  }
  func.func @transform_10(%arg0: i32) -> (i32, i32) {
    %c0_i32 = arith.constant 0 : i32
    %c0_i32_0 = arith.constant 0 : i32
    %c0_i32_1 = arith.constant 0 : i32
    return %c0_i32, %c0_i32_0 : i32, i32
  }
  func.func @transform_11(%arg0: i32) -> (i32, i32) {
    %c0_i32 = arith.constant 0 : i32
    %c0_i32_0 = arith.constant 0 : i32
    %c0_i32_1 = arith.constant 0 : i32
    return %c0_i32, %c0_i32_0 : i32, i32
  }
  func.func @transform_12(%arg0: i32) -> (i32, i32) {
    %c0_i32 = arith.constant 0 : i32
    %c0_i32_0 = arith.constant 0 : i32
    %c0_i32_1 = arith.constant 0 : i32
    return %c0_i32, %c0_i32_0 : i32, i32
  }
  func.func @transform_13(%arg0: i32) -> (i32, i32) {
    %c0_i32 = arith.constant 0 : i32
    %c0_i32_0 = arith.constant 0 : i32
    return %arg0, %c0_i32 : i32, i32
  }
}

</mosaic_0001>

<bundles_post_ra>
// kernel: tpu_custom_call.1
= control target key start
LH: loop header
LB: loop body
LE: loop exit
PB: predicated region body
PF: predicated region fallthrough
CT: control target
= control target key end

     0   :  { %18 = vsyncpa [#allocation3], 0  ;;  %s1882_s0 = inlined_call_operand.hbm [shape: bf16[2,384], index: 0, kind: input, shape index: {}]   ;;  %s1883_s1 = inlined_call_operand.hbm [shape: bf16[128,256], index: 1, kind: input, shape index: {}]   ;;  %s1884_s2 = inlined_call_operand.hbm [shape: f32[1,256], index: 2, kind: input, shape index: {}]   ;;  %s1885_s3 = inlined_call_operand.hbm [shape: bf16[128,256], index: 3, kind: input, shape index: {}]   ;;  %s1886_s4 = inlined_call_operand.vmem [shape: f32[1,256], index: 4, kind: input, shape index: {}]   ;;  %s1887_s5 = inlined_call_operand.hbm [shape: bf16[256,128], index: 5, kind: input, shape index: {}]   ;;  %s1888_s6 = inlined_call_operand.hbm [shape: bf16[256,128], index: 6, kind: input, shape index: {}]   ;;  %s1889_s7 = inlined_call_operand.hbm [shape: bf16[128,128], index: 7, kind: input, shape index: {}]   ;;  %s1890_s8 = inlined_call_operand.vmem [shape: f32[1,128], index: 8, kind: input, shape index: {}]   ;;  %s1891_s9 = inlined_call_operand.hbm [shape: bf16[128,128], index: 9, kind: input, shape index: {}]   ;;  %s1892_s10 = inlined_call_operand.vmem [shape: f32[1,128], index: 10, kind: input, shape index: {}]   ;;  %s1893_s11 = inlined_call_operand.hbm [shape: bf16[128,128], index: 11, kind: input, shape index: {}]   ;;  %s1894_s12 = inlined_call_operand.vmem [shape: f32[1,128], index: 12, kind: input, shape index: {}]   ;;  %s1895_s13 = inlined_call_operand.hbm [shape: f32[2,128], index: 13, kind: output, shape index: {}]  }
   0x1   :  { %19 = vsyncpa [#allocation6], 0 }
   0x2   :  { %20 = vsyncpa [#allocation9], 0 }
   0x3   :  { %21 = vsyncpa [#allocation12], 0 }
   0x4   :  { %22 = vsyncpa [#allocation15], 0  ;;  %s39_s27 = sshll.u32 %s1883_s1, 4  ;;  %s40_s27 = int_to_ptr.hbm [resolvable:$true] %s39_s27 }
   0x5   :  { %23 = vsyncpa [#allocation4], 0  ;;  %s1741_s28 = smov [#allocation5]   ;;  %s63_s15 = sshll.u32 %s1885_s3, 4  ;;  %s64_s15 = int_to_ptr.hbm [resolvable:$true] %s63_s15 }
   0x6   :  { %s41_s29 = sshll.u32 %s1741_s28, 4  ;;  %s1742_s16 = smov 128   ;;  %s42_s29 = int_to_ptr.vmem [resolvable:$true] %s41_s29 }
   0x7   :  { %s1743_s17 = smov 8   ;;  %s1744_s18 = smov [#allocation8]  }
   0x8   :  { %47 = dma.hbm_to_vmem [thread:$0]  %s40_s27, 2048, %s42_s29, [#allocation6], %s1742_s16, %s1742_s16, %s1743_s17  }
   0x9   :  { %s65_s19 = sshll.u32 %s1744_s18, 4  ;;  %s91_s1 = sshll.u32 %s1888_s6, 4  ;;  %s66_s19 = int_to_ptr.vmem [resolvable:$true] %s65_s19  ;;  %s92_s1 = int_to_ptr.hbm [resolvable:$true] %s91_s1 }
   0xa   :  { %71 = dma.hbm_to_vmem [thread:$0]  %s64_s15, 2048, %s66_s19, [#allocation9], %s1742_s16, %s1742_s16, %s1743_s17  }
   0xb   :  { %s1745_s22 = smov [#allocation11]   ;;  %s119_s3 = sshll.u32 %s1891_s9, 4  ;;  %s120_s3 = int_to_ptr.hbm [resolvable:$true] %s119_s3 }
   0xc   :  { %s93_s23 = sshll.u32 %s1745_s22, 4  ;;  %s1746_s26 = smov 64   ;;  %s94_s23 = int_to_ptr.vmem [resolvable:$true] %s93_s23 }
   0xd   :  { %s1747_s28 = smov 4   ;;  %s1748_s27 = smov [#allocation14]  }
   0xe   :  { %99 = dma.hbm_to_vmem [thread:$0]  %s92_s1, 2048, %s94_s23, [#allocation12], %s1746_s26, %s1746_s26, %s1747_s28  }
   0xf   :  { %s121_s29 = sshll.u32 %s1748_s27, 4  ;;  %s29_s6 = sshll.u32 %s1882_s0, 4  ;;  %s122_s29 = int_to_ptr.vmem [resolvable:$true] %s121_s29  ;;  %s30_s6 = int_to_ptr.hbm [resolvable:$true] %s29_s6 }
  0x10   :  { %127 = dma.hbm_to_vmem [thread:$0]  %s120_s3, 1024, %s122_s29, [#allocation15], %s1746_s26, %s1746_s26, %s1747_s28  }
  0x11   :  { %s53_s16 = sshll.u32 %s1884_s2, 4  ;;  %s1749_s17 = smov [#allocation2]   ;;  %s54_s16 = int_to_ptr.hbm [resolvable:$true] %s53_s16 }
  0x12   :  { %s31_s18 = sshll.u32 %s1749_s17, 4  ;;  %s1750_s19 = smov [#allocation7]   ;;  %s32_s18 = int_to_ptr.vmem [resolvable:$true] %s31_s18 }
  0x13   :  { %34 = dma.hbm_to_vmem [thread:$0]  %s30_s6, 48, %s32_s18, [#allocation3]  }
  0x14   :  { %s55_s20 = sshll.u32 %s1750_s19, 4  ;;  %s78_s0 = sshll.u32 %s1887_s5, 4  ;;  %s56_s20 = int_to_ptr.vmem [resolvable:$true] %s55_s20  ;;  %s79_s0 = int_to_ptr.hbm [resolvable:$true] %s78_s0 }
  0x15   :  { %58 = dma.hbm_to_vmem [thread:$0]  %s54_s16, 32, %s56_s20, [#allocation6]  }
  0x16   :  { %s104_s24 = sshll.u32 %s1889_s7, 4  ;;  %s1751_s25 = smov [#allocation10]   ;;  %s105_s24 = int_to_ptr.hbm [resolvable:$true] %s104_s24 }
  0x17   :  { %s80_s2 = sshll.u32 %s1751_s25, 4  ;;  %s1752_s3 = smov [#allocation13]   ;;  %s81_s2 = int_to_ptr.vmem [resolvable:$true] %s80_s2 }
  0x18   :  { %86 = dma.hbm_to_vmem [thread:$0]  %s79_s0, 2048, %s81_s2, [#allocation9], %s1746_s26, %s1746_s26, %s1747_s28  }
  0x19   :  { %s106_s27 = sshll.u32 %s1752_s3, 4  ;;  %s134_s5 = sshll.u32 %s1893_s11, 4  ;;  %s107_s27 = int_to_ptr.vmem [resolvable:$true] %s106_s27  ;;  %s135_s5 = int_to_ptr.hbm [resolvable:$true] %s134_s5 }
  0x1a   :  { %112 = dma.hbm_to_vmem [thread:$0]  %s105_s24, 1024, %s107_s27, [#allocation12], %s1746_s26, %s1746_s26, %s1747_s28  }
  0x1b   :  { %s1753_s7 = smov [#allocation16]  }
  0x1c   :  { %s136_s14 = sshll.u32 %s1753_s7, 4  ;;  %s137_s14 = int_to_ptr.vmem [resolvable:$true] %s136_s14 }
  0x1d   :  { %142 = dma.hbm_to_vmem [thread:$0]  %s135_s5, 1024, %s137_s14, [#allocation15], %s1746_s26, %s1746_s26, %s1747_s28  }
  0x1e   :  { %1729 = dma.done.wait [#allocation3], 48  }
  0x1f   :  { %1730 = vsyncadd [#allocation3], 4294967248 }
  0x20   :  { %1731 = dma.done.wait [#allocation6], 2080  }
  0x21   :  { %1732 = vsyncadd [#allocation6], 4294965216 }
  0x22   :  { %1733 = dma.done.wait [#allocation9], 4096  }
  0x23   :  { %1734 = vsyncadd [#allocation9], 4294963200 }
  0x24   :  { %1735 = dma.done.wait [#allocation12], 3072  }
  0x25   :  { %1736 = vsyncadd [#allocation12], 4294964224 }
  0x26   :  { %1737 = dma.done.wait [#allocation15], 2048  }
  0x27   :  { %1738 = vsyncadd [#allocation15], 4294965248  ;;  %v1154_v0 = vld [vmem:[#allocation8 + $0x70] sm:$0xf]  ;;  %v1415_v1 = vld [vmem:[#allocation8 + $0x74] sm:$0xf0] }
  0x28   :  { %v1414_v2 = vld [vmem:[#allocation8 + $0x74] sm:$0xf]  ;;  %v1155_v3 = vor.u32 %v1415_v1, %v1154_v0  ;;  %v1156_v4 = vld [vmem:[#allocation8 + $0x78] sm:$0xf0]  ;;  %v1090_v5 = vld [vmem:[#allocation5 + $0x70] sm:$0xf] }
  0x29   :  { %v1399_v6 = vld [vmem:[#allocation5 + $0x74] sm:$0xf0]  ;;  %v1159_v7 = vor.u32 %v1414_v2, %v1156_v4  ;;  %v1398_v9 = vld [vmem:[#allocation5 + $0x74] sm:$0xf]  ;;  %v1092_v10 = vld [vmem:[#allocation5 + $0x78] sm:$0xf0] }
  0x2a   :  { %v1091_v8 = vor.u32 %v1399_v6, %v1090_v5  ;;  %v1146_v11 = vld [vmem:[#allocation8 + $0x60] sm:$0xf]  ;;  %420 = vmatpush.bf16.msra.mxu2 %v1155_v3  ;;  %v1095_v12 = vor.u32 %v1398_v9, %v1092_v10  ;;  %v1413_v13 = vld [vmem:[#allocation8 + $0x64] sm:$0xf0]  ;;  %v1412_v14 = vld [vmem:[#allocation8 + $0x64] sm:$0xf] }
  0x2b   :  { %v1148_v15 = vld [vmem:[#allocation8 + $0x68] sm:$0xf0]  ;;  %433 = vmatpush.bf16.msra.mxu3 %v1159_v7  ;;  %v1147_v16 = vor.u32 %v1413_v13, %v1146_v11  ;;  %v1082_v18 = vld [vmem:[#allocation5 + $0x60] sm:$0xf]  ;;  %v1397_v19 = vld [vmem:[#allocation5 + $0x64] sm:$0xf0] }
  0x2c   :  { %284 = vmatpush.bf16.msra.mxu0 %v1091_v8  ;;  %v1151_v17 = vor.u32 %v1412_v14, %v1148_v15  ;;  %v1396_v20 = vld [vmem:[#allocation5 + $0x64] sm:$0xf]  ;;  %297 = vmatpush.bf16.msra.mxu1 %v1095_v12  ;;  %v1083_v21 = vor.u32 %v1397_v19, %v1082_v18  ;;  %v1084_v22 = vld [vmem:[#allocation5 + $0x68] sm:$0xf0]  ;;  %v1138_v23 = vld [vmem:[#allocation8 + $0x50] sm:$0xf] }
  0x2d   :  { %v1411_v24 = vld [vmem:[#allocation8 + $0x54] sm:$0xf0]  ;;  %v1087_v25 = vor.u32 %v1396_v20, %v1084_v22  ;;  %v1410_v26 = vld [vmem:[#allocation8 + $0x54] sm:$0xf]  ;;  %v1140_v27 = vld [vmem:[#allocation8 + $0x58] sm:$0xf0] }
  0x2e   :  { %v1074_v28 = vld [vmem:[#allocation5 + $0x50] sm:$0xf]  ;;  %421 = vmatpush.bf16.msra.mxu2 %v1147_v16  ;;  %v1139_v29 = vor.u32 %v1411_v24, %v1138_v23  ;;  %v1395_v30 = vld [vmem:[#allocation5 + $0x54] sm:$0xf0]  ;;  %v1394_v31 = vld [vmem:[#allocation5 + $0x54] sm:$0xf]  ;;  %v1143_v33 = vor.u32 %v1410_v26, %v1140_v27 }
  0x2f   :  { %v1076_v32 = vld [vmem:[#allocation5 + $0x58] sm:$0xf0]  ;;  %434 = vmatpush.bf16.msra.mxu3 %v1151_v17  ;;  %v1075_v34 = vor.u32 %v1395_v30, %v1074_v28  ;;  %v1130_v35 = vld [vmem:[#allocation8 + $0x40] sm:$0xf]  ;;  %v1409_v36 = vld [vmem:[#allocation8 + $0x44] sm:$0xf0] }
  0x30   :  { %285 = vmatpush.bf16.msra.mxu0 %v1083_v21  ;;  %v1408_v37 = vld [vmem:[#allocation8 + $0x44] sm:$0xf]  ;;  %298 = vmatpush.bf16.msra.mxu1 %v1087_v25  ;;  %v1079_v38 = vor.u32 %v1394_v31, %v1076_v32  ;;  %v1132_v39 = vld [vmem:[#allocation8 + $0x48] sm:$0xf0]  ;;  %v1066_v40 = vld [vmem:[#allocation5 + $0x40] sm:$0xf]  ;;  %v1131_v44 = vor.u32 %v1409_v36, %v1130_v35 }
  0x31   :  { %v1393_v41 = vld [vmem:[#allocation5 + $0x44] sm:$0xf0]  ;;  %v1392_v42 = vld [vmem:[#allocation5 + $0x44] sm:$0xf]  ;;  %v1068_v43 = vld [vmem:[#allocation5 + $0x48] sm:$0xf0]  ;;  %v1135_v45 = vor.u32 %v1408_v37, %v1132_v39 }
  0x32   :  { %422 = vmatpush.bf16.msra.mxu2 %v1139_v29  ;;  %v1067_v46 = vor.u32 %v1393_v41, %v1066_v40  ;;  %v1122_v47 = vld [vmem:[#allocation8 + $0x30] sm:$0xf]  ;;  %v1407_v48 = vld [vmem:[#allocation8 + $0x34] sm:$0xf0]  ;;  %v1406_v49 = vld [vmem:[#allocation8 + $0x34] sm:$0xf]  ;;  %v1071_v50 = vor.u32 %v1392_v42, %v1068_v43 }
  0x33   :  { %435 = vmatpush.bf16.msra.mxu3 %v1143_v33  ;;  %v1124_v51 = vld [vmem:[#allocation8 + $0x38] sm:$0xf0]  ;;  %v1058_v52 = vld [vmem:[#allocation5 + $0x30] sm:$0xf]  ;;  %v1391_v53 = vld [vmem:[#allocation5 + $0x34] sm:$0xf0]  ;;  %v1123_v56 = vor.u32 %v1407_v48, %v1122_v47 }
  0x34   :  { %286 = vmatpush.bf16.msra.mxu0 %v1075_v34  ;;  %299 = vmatpush.bf16.msra.mxu1 %v1079_v38  ;;  %v1390_v54 = vld [vmem:[#allocation5 + $0x34] sm:$0xf]  ;;  %v1060_v55 = vld [vmem:[#allocation5 + $0x38] sm:$0xf0]  ;;  %v1127_v57 = vor.u32 %v1406_v49, %v1124_v51  ;;  %v1059_v58 = vor.u32 %v1391_v53, %v1058_v52  ;;  %v1114_v59 = vld [vmem:[#allocation8 + $0x20] sm:$0xf] }
  0x35   :  { %v1405_v60 = vld [vmem:[#allocation8 + $0x24] sm:$0xf0]  ;;  %v1404_v61 = vld [vmem:[#allocation8 + $0x24] sm:$0xf]  ;;  %v1063_v62 = vor.u32 %v1390_v54, %v1060_v55  ;;  %v1116_v63 = vld [vmem:[#allocation8 + $0x28] sm:$0xf0] }
  0x36   :  { %423 = vmatpush.bf16.msra.mxu2 %v1131_v44  ;;  %v1050_v0 = vld [vmem:[#allocation5 + $0x20] sm:$0xf]  ;;  %v1389_v1 = vld [vmem:[#allocation5 + $0x24] sm:$0xf0]  ;;  %v1388_v2 = vld [vmem:[#allocation5 + $0x24] sm:$0xf]  ;;  %v1115_v4 = vor.u32 %v1405_v60, %v1114_v59  ;;  %v1119_v7 = vor.u32 %v1404_v61, %v1116_v63 }
  0x37   :  { %436 = vmatpush.bf16.msra.mxu3 %v1135_v45  ;;  %v1052_v3 = vld [vmem:[#allocation5 + $0x28] sm:$0xf0]  ;;  %v1106_v5 = vld [vmem:[#allocation8 + $0x10] sm:$0xf]  ;;  %v1403_v6 = vld [vmem:[#allocation8 + $0x14] sm:$0xf0]  ;;  %v1051_v8 = vor.u32 %v1389_v1, %v1050_v0 }
  0x38   :  { %287 = vmatpush.bf16.msra.mxu0 %v1067_v46  ;;  %300 = vmatpush.bf16.msra.mxu1 %v1071_v50  ;;  %v1402_v9 = vld [vmem:[#allocation8 + $0x14] sm:$0xf]  ;;  %v1108_v10 = vld [vmem:[#allocation8 + $0x18] sm:$0xf0]  ;;  %v1055_v12 = vor.u32 %v1388_v2, %v1052_v3  ;;  %v1042_v13 = vld [vmem:[#allocation5 + $0x10] sm:$0xf]  ;;  %v1107_v17 = vor.u32 %v1403_v6, %v1106_v5 }
  0x39   :  { %v181_v11 = vld [vmem:[#allocation2] sm:$0x7]  ;;  %v1387_v14 = vld [vmem:[#allocation5 + $0x14] sm:$0xf0]  ;;  %v1386_v15 = vld [vmem:[#allocation5 + $0x14] sm:$0xf]  ;;  %v1111_v18 = vor.u32 %v1402_v9, %v1108_v10 }
  0x3a   :  { %424 = vmatpush.bf16.msra.mxu2 %v1123_v56  ;;  %337 = vst [vmem:[#allocation1] ss:$9 sm:$0xff] %v181_v11  ;;  %v1044_v16 = vld [vmem:[#allocation5 + $0x18] sm:$0xf0]  ;;  %v1043_v19 = vor.u32 %v1387_v14, %v1042_v13  ;;  %v1098_v20 = vld [vmem:[#allocation8] sm:$0xf] }
  0x3b   :  { %437 = vmatpush.bf16.msra.mxu3 %v1127_v57  ;;  %v1401_v21 = vld [vmem:[#allocation8 + $0x4] sm:$0xf0]  ;;  %v1400_v22 = vld [vmem:[#allocation8 + $0x4] sm:$0xf]  ;;  %v1047_v23 = vor.u32 %v1386_v15, %v1044_v16  ;;  %v1100_v24 = vld [vmem:[#allocation8 + $0x8] sm:$0xf0] }
  0x3c   :  { %288 = vmatpush.bf16.msra.mxu0 %v1059_v58  ;;  %301 = vmatpush.bf16.msra.mxu1 %v1063_v62  ;;  %v1034_v25 = vld [vmem:[#allocation5] sm:$0xf]  ;;  %v1385_v26 = vld [vmem:[#allocation5 + $0x4] sm:$0xf0]  ;;  %v1384_v27 = vld [vmem:[#allocation5 + $0x4] sm:$0xf]  ;;  %v1099_v29 = vor.u32 %v1401_v21, %v1098_v20  ;;  %v1103_v30 = vor.u32 %v1400_v22, %v1100_v24 }
  0x3d   :  { %v1036_v28 = vld [vmem:[#allocation5 + $0x8] sm:$0xf0]  ;;  %v1035_v31 = vor.u32 %v1385_v26, %v1034_v25  ;;  %v1439_v34 = vld [vmem:[#allocation11 + $0x38] sm:$0xff]  ;;  %v1438_v37 = vld [vmem:[#allocation11 + $0x30] sm:$0xff]  ;;  %s1754_s16 = smov [#allocation17]   ;;  %s1018_s20 = sshll.u32 %s1895_s13, 4  ;;  %s1019_s20 = int_to_ptr.hbm [resolvable:$true] %s1018_s20 }
  0x3e   :  { %425 = vmatpush.bf16.msra.mxu2 %v1115_v4  ;;  %v1039_v33 = vor.u32 %v1384_v27, %v1036_v28  ;;  %v1431_v35 = vld [vmem:[#allocation10 + $0x78] sm:$0xff]  ;;  %v1430_v39 = vld [vmem:[#allocation10 + $0x70] sm:$0xff]  ;;  %v1437_v41 = vld [vmem:[#allocation11 + $0x28] sm:$0xff]  ;;  %s1016_s17 = sshll.u32 %s1754_s16, 4  ;;  %s1017_s17 = int_to_ptr.vmem [resolvable:$true] %s1016_s17 }
  0x3f   :  { %438 = vmatpush.bf16.msra.mxu3 %v1119_v7  ;;  %v1423_v36 = vld [vmem:[#allocation10 + $0x38] sm:$0xff]  ;;  %v1422_v40 = vld [vmem:[#allocation10 + $0x30] sm:$0xff]  ;;  %v1429_v43 = vld [vmem:[#allocation10 + $0x68] sm:$0xff] }
  0x40   :  { %289 = vmatpush.bf16.msra.mxu0 %v1051_v8  ;;  %302 = vmatpush.bf16.msra.mxu1 %v1055_v12  ;;  %v1447_v38 = vld [vmem:[#allocation11 + $0x78] sm:$0xff]  ;;  %v1446_v42 = vld [vmem:[#allocation11 + $0x70] sm:$0xff]  ;;  %v1421_v44 = vld [vmem:[#allocation10 + $0x28] sm:$0xff] }
  0x41   :  { %v338_v32 = vld [vmem:[#allocation1 + $0x9] sm:$0xff]  ;;  %v1445_v46 = vld [vmem:[#allocation11 + $0x68] sm:$0xff]  ;;  %v1434_v53 = vld [vmem:[#allocation11 + $0x10] sm:$0xff] }
  0x42   :  { %426 = vmatpush.bf16.msra.mxu2 %v1107_v17  ;;  %774 = vst [vmem:[#allocation1] ss:$9 sm:$0xff] %v181_v11  ;;  %v1436_v45 = vld [vmem:[#allocation11 + $0x20] sm:$0xff]  ;;  %v1435_v49 = vld [vmem:[#allocation11 + $0x18] sm:$0xff]  ;;  %v1426_v55 = vld [vmem:[#allocation10 + $0x50] sm:$0xff] }
  0x43   :  { %439 = vmatpush.bf16.msra.mxu3 %v1111_v18  ;;  %v1428_v47 = vld [vmem:[#allocation10 + $0x60] sm:$0xff]  ;;  %v1427_v51 = vld [vmem:[#allocation10 + $0x58] sm:$0xff]  ;;  %v1418_v56 = vld [vmem:[#allocation10 + $0x10] sm:$0xff] }
  0x44   :  { %290 = vmatpush.bf16.msra.mxu0 %v1043_v19  ;;  %303 = vmatpush.bf16.msra.mxu1 %v1047_v23  ;;  %v1420_v48 = vld [vmem:[#allocation10 + $0x20] sm:$0xff]  ;;  %v1419_v52 = vld [vmem:[#allocation10 + $0x18] sm:$0xff]  ;;  %v1433_v57 = vld [vmem:[#allocation11 + $0x8] sm:$0xff] }
  0x45   :  { %v1444_v50 = vld [vmem:[#allocation11 + $0x60] sm:$0xff]  ;;  %v1443_v54 = vld [vmem:[#allocation11 + $0x58] sm:$0xff]  ;;  %v1442_v60 = vld [vmem:[#allocation11 + $0x50] sm:$0xff] }
  0x46   :  { %427 = vmatpush.bf16.msra.mxu2 %v1099_v29  ;;  %v1432_v58 = vld [vmem:[#allocation11] sm:$0xff]  ;;  %v1455_v59 = vld [vmem:[#allocation13 + $0x38] sm:$0xff]  ;;  %v1417_v61 = vld [vmem:[#allocation10 + $0x8] sm:$0xff] }
  0x47   :  { %440 = vmatpush.bf16.msra.mxu3 %v1103_v30  ;;  %v1454_v62 = vld [vmem:[#allocation13 + $0x30] sm:$0xff]  ;;  %v1425_v63 = vld [vmem:[#allocation10 + $0x48] sm:$0xff]  ;;  %v1416_v1 = vld [vmem:[#allocation10] sm:$0xff] }
  0x48   :  { %291 = vmatpush.bf16.msra.mxu0 %v1035_v31  ;;  %304 = vmatpush.bf16.msra.mxu1 %v1039_v33  ;;  %v1441_v0 = vld [vmem:[#allocation11 + $0x48] sm:$0xff]  ;;  %v1424_v3 = vld [vmem:[#allocation10 + $0x40] sm:$0xff]  ;;  %v1451_v6 = vld [vmem:[#allocation13 + $0x18] sm:$0xff] }
  0x49   :  { %428 = vmatmul.bf16.vlgmr.msra.gmra.mxu2 %v338_v32  ;;  %v1453_v2 = vld [vmem:[#allocation13 + $0x28] sm:$0xff]  ;;  %v1440_v4 = vld [vmem:[#allocation11 + $0x40] sm:$0xff]  ;;  %v1450_v7 = vld [vmem:[#allocation13 + $0x10] sm:$0xff] }
  0x4a   :  { %441 = vmatmul.bf16.vlgmr.msra.gmra.mxu3 %v338_v32  ;;  %732 = vmatpush.bf16.msrb.mxu2 %v1423_v36  ;;  %v1452_v5 = vld [vmem:[#allocation13 + $0x20] sm:$0xff]  ;;  %v1449_v8 = vld [vmem:[#allocation13 + $0x8] sm:$0xff]  ;;  %v198_v10 = vld [vmem:[#allocation7] sm:$0x3] }
  0x4b   :  { %745 = vmatpush.bf16.msrb.mxu3 %v1431_v35  ;;  %292 = vmatmul.bf16.vlgmr.msra.gmra.mxu0 %v181_v11  ;;  %v1448_v9 = vld [vmem:[#allocation13] sm:$0xff]  ;;  %v200_v12 = vperm.slane %v198_v10, 0  ;;  %v201_v13 = vperm.slane %v198_v10, 1  ;;  %v1462_v14 = vld [vmem:[#allocation14 + $0x30] sm:$0xff] }
  0x4c   :  { %610 = vmatpush.bf16.msrb.mxu0 %v1439_v34  ;;  %305 = vmatmul.bf16.vlgmr.msra.gmra.mxu1 %v181_v11  ;;  %v1463_v11 = vld [vmem:[#allocation14 + $0x38] sm:$0xff]  ;;  %v330_v15 = vld [vmem:[%s1886_s4] sm:$0x3] }
  0x4d   :  { %623 = vmatpush.bf16.msrb.mxu1 %v1447_v38  ;;  %v332_v20 = vperm.slane %v330_v15, 0  ;;  %v333_v22 = vperm.slane %v330_v15, 1  ;;  %v775_v38 = vld [vmem:[#allocation1 + $0x12] sm:$0xff] }
  0x4e   :  { %733 = vmatpush.bf16.msrb.mxu2 %v1422_v40  ;;  %v1460_v40 = vld [vmem:[#allocation14 + $0x20] sm:$0xff] }
  0x4f   :  { %746 = vmatpush.bf16.msrb.mxu3 %v1430_v39  ;;  %v1461_v39 = vld [vmem:[#allocation14 + $0x28] sm:$0xff] }
  0x50   :  { %611 = vmatpush.bf16.msrb.mxu0 %v1438_v37 }
  0x51   :  { %624 = vmatpush.bf16.msrb.mxu1 %v1446_v42  ;;  %v1458_v42 = vld [vmem:[#allocation14 + $0x10] sm:$0xff] }
  0x52   :  { %734 = vmatpush.bf16.msrb.mxu2 %v1421_v44  ;;  %v1456_v44 = vld [vmem:[#allocation14] sm:$0xff] }
  0x53   :  { %747 = vmatpush.bf16.msrb.mxu3 %v1429_v43  ;;  %v1457_v43 = vld [vmem:[#allocation14 + $0x8] sm:$0xff] }
  0x54   :  { %612 = vmatpush.bf16.msrb.mxu0 %v1437_v41  ;;  %v1459_v41 = vld [vmem:[#allocation14 + $0x18] sm:$0xff] }
  0x55   :  { %625 = vmatpush.bf16.msrb.mxu1 %v1445_v46  ;;  %v1470_v46 = vld [vmem:[#allocation16 + $0x30] sm:$0xff] }
  0x56   :  { %735 = vmatpush.bf16.msrb.mxu2 %v1420_v48 }
  0x57   :  { %748 = vmatpush.bf16.msrb.mxu3 %v1428_v47  ;;  %v1469_v47 = vld [vmem:[#allocation16 + $0x28] sm:$0xff] }
  0x58   :  { %613 = vmatpush.bf16.msrb.mxu0 %v1436_v45  ;;  %v1471_v45 = vld [vmem:[#allocation16 + $0x38] sm:$0xff] }
  0x59   :  { %626 = vmatpush.bf16.msrb.mxu1 %v1444_v50 }
  0x5a   :  { %736 = vmatpush.bf16.msrb.mxu2 %v1419_v52  ;;  %v1468_v52 = vld [vmem:[#allocation16 + $0x20] sm:$0xff] }
  0x5b   :  { %749 = vmatpush.bf16.msrb.mxu3 %v1427_v51 }
  0x5c   :  { %614 = vmatpush.bf16.msrb.mxu0 %v1435_v49 }
  0x5d   :  { %627 = vmatpush.bf16.msrb.mxu1 %v1443_v54  ;;  %v1467_v54 = vld [vmem:[#allocation16 + $0x18] sm:$0xff] }
  0x5e   :  { %737 = vmatpush.bf16.msrb.mxu2 %v1418_v56 }
  0x5f   :  { %750 = vmatpush.bf16.msrb.mxu3 %v1426_v55 }
  0x60   :  { %615 = vmatpush.bf16.msrb.mxu0 %v1434_v53 }
  0x61   :  { %628 = vmatpush.bf16.msrb.mxu1 %v1442_v60  ;;  %v1466_v60 = vld [vmem:[#allocation16 + $0x10] sm:$0xff] }
  0x62   :  { %738 = vmatpush.bf16.msrb.mxu2 %v1417_v61 }
  0x63   :  { %751 = vmatpush.bf16.msrb.mxu3 %v1425_v63 }
  0x64   :  { %616 = vmatpush.bf16.msrb.mxu0 %v1433_v57 }
  0x65   :  { %629 = vmatpush.bf16.msrb.mxu1 %v1441_v0 }
  0x66   :  { %739 = vmatpush.bf16.msrb.mxu2 %v1416_v1 }
  0x67   :  { %752 = vmatpush.bf16.msrb.mxu3 %v1424_v3 }
  0x68   :  { %617 = vmatpush.bf16.msrb.mxu0 %v1432_v58 }
  0x69   :  { %630 = vmatpush.bf16.msrb.mxu1 %v1440_v4 }
  0x6a   :  { %997 = vmatpush.bf16.msra.mxu2 %v1471_v45 }
  0x6c   :  { %825 = vmatpush.bf16.msra.mxu0 %v1455_v59 }
  0x6d   :  { %914 = vmatpush.bf16.msra.mxu1 %v1463_v11 }
  0x6e   :  { %998 = vmatpush.bf16.msra.mxu2 %v1470_v46 }
  0x70   :  { %826 = vmatpush.bf16.msra.mxu0 %v1454_v62  ;;  %v1486_v62 = vld [vmem:[%s1890_s8] ss:$0 sm:$0xff] }
  0x71   :  { %915 = vmatpush.bf16.msra.mxu1 %v1462_v14 }
  0x72   :  { %999 = vmatpush.bf16.msra.mxu2 %v1469_v47 }
  0x74   :  { %827 = vmatpush.bf16.msra.mxu0 %v1453_v2 }
  0x75   :  { %916 = vmatpush.bf16.msra.mxu1 %v1461_v39 }
  0x76   :  { %1000 = vmatpush.bf16.msra.mxu2 %v1468_v52 }
  0x78   :  { %828 = vmatpush.bf16.msra.mxu0 %v1452_v5  ;;  %v1465_v5 = vld [vmem:[#allocation16 + $0x8] sm:$0xff] }
  0x79   :  { %917 = vmatpush.bf16.msra.mxu1 %v1460_v40 }
  0x7a   :  { %1001 = vmatpush.bf16.msra.mxu2 %v1467_v54 }
  0x7c   :  { %829 = vmatpush.bf16.msra.mxu0 %v1451_v6  ;;  %v1464_v6 = vld [vmem:[#allocation16] sm:$0xff] }
  0x7d   :  { %918 = vmatpush.bf16.msra.mxu1 %v1459_v41 }
  0x7e   :  { %1002 = vmatpush.bf16.msra.mxu2 %v1466_v60 }
  0x80   :  { %830 = vmatpush.bf16.msra.mxu0 %v1450_v7  ;;  %v1487_v7 = vld [vmem:[%s1892_s10] ss:$0 sm:$0xff] }
  0x81   :  { %919 = vmatpush.bf16.msra.mxu1 %v1458_v42 }
  0x82   :  { %1003 = vmatpush.bf16.msra.mxu2 %v1465_v5 }
  0x84   :  { %831 = vmatpush.bf16.msra.mxu0 %v1449_v8 }
  0x85   :  { %920 = vmatpush.bf16.msra.mxu1 %v1457_v43 }
  0x86   :  { %1004 = vmatpush.bf16.msra.mxu2 %v1464_v6 }
  0x88   :  { %832 = vmatpush.bf16.msra.mxu0 %v1448_v9 }
  0x89   :  { %921 = vmatpush.bf16.msra.mxu1 %v1456_v44 }
  0xc8   :  { %v293_v16 = vpop.f32.mrf.mxu0 }
  0xc9   :  { %v294_v17 = vadd.f32 %v293_v16, %v200_v12  ;;  %v306_v18 = vpop.f32.mrf.mxu1 }
  0xca   :  { %v307_v19 = vadd.f32 %v306_v18, %v201_v13  ;;  %v1488_v13 = vld [vmem:[%s1894_s12] ss:$0 sm:$0xff] }
  0xcb   :  { %v310_v21 = vmax.f32 %v294_v17, 0.0 }
  0xcc   :  { %v311_v23 = vmax.f32 %v307_v19, 0.0  ;;  %v429_v25 = vpop.f32.mrf.mxu2 }
  0xcd   :  { %v312_v24 = vpack.c.bf16 %v310_v21, %v310_v21  ;;  %v430_v27 = vadd.f32 %v429_v25, %v332_v20  ;;  %v442_v28 = vpop.f32.mrf.mxu3 }
  0xce   :  { %v313_v26 = vpack.c.bf16 %v311_v23, %v311_v23  ;;  %v443_v29 = vadd.f32 %v442_v28, %v333_v22 }
  0xcf   :  { %740 = vmatmul.bf16.vlgmr.msrb.gmra.mxu2 %v312_v24  ;;  %v446_v30 = vmax.f32 %v430_v27, 0.0 }
  0xd0   :  { %753 = vmatmul.bf16.vlgmr.msrb.gmra.mxu3 %v313_v26  ;;  %v295_v31 = vpop.f32.mrf.mxu0  ;;  %v447_v32 = vmax.f32 %v443_v29, 0.0 }
  0xd1   :  { %v308_v33 = vpop.f32.mrf.mxu1  ;;  %v448_v34 = vpack.c.bf16 %v446_v30, %v446_v30 }
  0xd2   :  { %v449_v35 = vpack.c.bf16 %v447_v32, %v447_v32 }
  0xd3   :  { %618 = vmatmul.bf16.vlgmr.msrb.gmra.mxu0 %v448_v34 }
  0xd4   :  { %631 = vmatmul.bf16.vlgmr.msrb.gmra.mxu1 %v449_v35  ;;  %v431_v36 = vpop.f32.mrf.mxu2 }
  0xd5   :  { %v444_v37 = vpop.f32.mrf.mxu3 }
  0xe3   :  { %833 = vmatmul.bf16.vlgmr.msra.gmra.mxu0 %v775_v38 }
 0x150   :  { %v619_v48 = vpop.f32.mrf.mxu0 }
 0x151   :  { %v632_v49 = vpop.f32.mrf.mxu1 }
 0x152   :  { %v741_v50 = vpop.f32.mrf.mxu2  ;;  %v633_v53 = vadd.f32 %v632_v49, %v619_v48 }
 0x153   :  { %v754_v51 = vpop.f32.mrf.mxu3 }
 0x154   :  { %v742_v59 = vadd.f32 %v741_v50, %v633_v53 }
 0x156   :  { %v755_v61 = vadd.f32 %v754_v51, %v742_v59 }
 0x158   :  { %v621_v55 = vpop.f32.mrf.mxu0 }
 0x159   :  { %v634_v56 = vpop.f32.mrf.mxu1 }
 0x15a   :  { %v743_v57 = vpop.f32.mrf.mxu2 }
 0x15b   :  { %v756_v58 = vpop.f32.mrf.mxu3 }
 0x160   :  { %v834_v63 = vpop.f32.mrf.mxu0 }
 0x161   :  { %v838_v0 = vadd.f32 %v834_v63, %v755_v61 }
 0x163   :  { %v843_v1 = vadd.f32 %v1486_v62, %v838_v0 }
 0x165   :  { %v844_v2 = vmax.f32 %v843_v1, 0.0 }
 0x167   :  { %v845_v3 = vpack.c.bf16 %v844_v2, %v844_v2 }
 0x168   :  { %v836_v4 = vpop.f32.mrf.mxu0 }
 0x169   :  { %922 = vmatmul.bf16.vlgmr.msra.gmra.mxu1 %v845_v3 }
 0x1e6   :  { %v923_v8 = vpop.f32.mrf.mxu1 }
 0x1e7   :  { %v924_v9 = vadd.f32 %v1487_v7, %v923_v8 }
 0x1e9   :  { %v927_v10 = vmax.f32 %v924_v9, 0.0 }
 0x1eb   :  { %v928_v11 = vpack.c.bf16 %v927_v10, %v927_v10 }
 0x1ed   :  { %1005 = vmatmul.bf16.vlgmr.msra.gmra.mxu2 %v928_v11 }
 0x1ee   :  { %v925_v12 = vpop.f32.mrf.mxu1 }
 0x270   :  { %v1006_v14 = vpop.f32.mrf.mxu2 }
 0x271   :  { %v1007_v15 = vadd.f32 %v1488_v13, %v1006_v14 }
 0x273   :  { %1010 = vst [vmem:[#allocation17] sm:$0x3] %v1007_v15 }
 0x274   :  { %1021 = dma.vmem_to_hbm [thread:$0]  %s1017_s17, 32, %s1019_s20, [#allocation4]  }
 0x278   :  { %v1008_v16 = vpop.f32.mrf.mxu2 }
 0x279   :  { %1739 = dma.done.wait [#allocation4], 32  }
 0x27a   :  { %1740 = vsyncadd [#allocation4], 4294967264 }
 0x27b   :  { %1026 = vsyncpa [#allocation3], 1 }
 0x27c   :  { %1027 = vsyncpa [#allocation6], 1 }
 0x27d   :  { %1028 = vsyncpa [#allocation9], 1 }
 0x27e   :  { %1029 = vsyncpa [#allocation12], 1 }
 0x27f   :  { %1030 = vsyncpa [#allocation15], 1 }
 0x280   :  { %1031 = vsyncpa [#allocation4], 1 }

// kernel: tpu_custom_call.1
= control target key start
LH: loop header
LB: loop body
LE: loop exit
PB: predicated region body
PF: predicated region fallthrough
CT: control target
= control target key end

     0   :  { %18 = vsyncpa [#allocation3], 0  ;;  %s1882_s0 = inlined_call_operand.hbm [shape: bf16[2,384], index: 0, kind: input, shape index: {}]   ;;  %s1883_s1 = inlined_call_operand.hbm [shape: bf16[128,256], index: 1, kind: input, shape index: {}]   ;;  %s1884_s2 = inlined_call_operand.hbm [shape: f32[1,256], index: 2, kind: input, shape index: {}]   ;;  %s1885_s3 = inlined_call_operand.hbm [shape: bf16[128,256], index: 3, kind: input, shape index: {}]   ;;  %s1886_s4 = inlined_call_operand.vmem [shape: f32[1,256], index: 4, kind: input, shape index: {}]   ;;  %s1887_s5 = inlined_call_operand.hbm [shape: bf16[256,128], index: 5, kind: input, shape index: {}]   ;;  %s1888_s6 = inlined_call_operand.hbm [shape: bf16[256,128], index: 6, kind: input, shape index: {}]   ;;  %s1889_s7 = inlined_call_operand.hbm [shape: bf16[128,128], index: 7, kind: input, shape index: {}]   ;;  %s1890_s8 = inlined_call_operand.vmem [shape: f32[1,128], index: 8, kind: input, shape index: {}]   ;;  %s1891_s9 = inlined_call_operand.hbm [shape: bf16[128,128], index: 9, kind: input, shape index: {}]   ;;  %s1892_s10 = inlined_call_operand.vmem [shape: f32[1,128], index: 10, kind: input, shape index: {}]   ;;  %s1893_s11 = inlined_call_operand.hbm [shape: bf16[128,128], index: 11, kind: input, shape index: {}]   ;;  %s1894_s12 = inlined_call_operand.vmem [shape: f32[1,128], index: 12, kind: input, shape index: {}]   ;;  %s1895_s13 = inlined_call_operand.hbm [shape: f32[2,128], index: 13, kind: output, shape index: {}]  }
   0x1   :  { %19 = vsyncpa [#allocation6], 0 }
   0x2   :  { %20 = vsyncpa [#allocation9], 0 }
   0x3   :  { %21 = vsyncpa [#allocation12], 0 }
   0x4   :  { %22 = vsyncpa [#allocation15], 0  ;;  %s39_s27 = sshll.u32 %s1883_s1, 4  ;;  %s40_s27 = int_to_ptr.hbm [resolvable:$true] %s39_s27 }
   0x5   :  { %23 = vsyncpa [#allocation4], 0  ;;  %s1741_s28 = smov [#allocation5]   ;;  %s63_s15 = sshll.u32 %s1885_s3, 4  ;;  %s64_s15 = int_to_ptr.hbm [resolvable:$true] %s63_s15 }
   0x6   :  { %s41_s29 = sshll.u32 %s1741_s28, 4  ;;  %s1742_s16 = smov 128   ;;  %s42_s29 = int_to_ptr.vmem [resolvable:$true] %s41_s29 }
   0x7   :  { %s1743_s17 = smov 8   ;;  %s1744_s18 = smov [#allocation8]  }
   0x8   :  { %47 = dma.hbm_to_vmem [thread:$0]  %s40_s27, 2048, %s42_s29, [#allocation6], %s1742_s16, %s1742_s16, %s1743_s17  }
   0x9   :  { %s65_s19 = sshll.u32 %s1744_s18, 4  ;;  %s91_s1 = sshll.u32 %s1888_s6, 4  ;;  %s66_s19 = int_to_ptr.vmem [resolvable:$true] %s65_s19  ;;  %s92_s1 = int_to_ptr.hbm [resolvable:$true] %s91_s1 }
   0xa   :  { %71 = dma.hbm_to_vmem [thread:$0]  %s64_s15, 2048, %s66_s19, [#allocation9], %s1742_s16, %s1742_s16, %s1743_s17  }
   0xb   :  { %s1745_s22 = smov [#allocation11]   ;;  %s119_s3 = sshll.u32 %s1891_s9, 4  ;;  %s120_s3 = int_to_ptr.hbm [resolvable:$true] %s119_s3 }
   0xc   :  { %s93_s23 = sshll.u32 %s1745_s22, 4  ;;  %s1746_s26 = smov 64   ;;  %s94_s23 = int_to_ptr.vmem [resolvable:$true] %s93_s23 }
   0xd   :  { %s1747_s28 = smov 4   ;;  %s1748_s27 = smov [#allocation14]  }
   0xe   :  { %99 = dma.hbm_to_vmem [thread:$0]  %s92_s1, 2048, %s94_s23, [#allocation12], %s1746_s26, %s1746_s26, %s1747_s28  }
   0xf   :  { %s121_s29 = sshll.u32 %s1748_s27, 4  ;;  %s29_s6 = sshll.u32 %s1882_s0, 4  ;;  %s122_s29 = int_to_ptr.vmem [resolvable:$true] %s121_s29  ;;  %s30_s6 = int_to_ptr.hbm [resolvable:$true] %s29_s6 }
  0x10   :  { %127 = dma.hbm_to_vmem [thread:$0]  %s120_s3, 1024, %s122_s29, [#allocation15], %s1746_s26, %s1746_s26, %s1747_s28  }
  0x11   :  { %s53_s16 = sshll.u32 %s1884_s2, 4  ;;  %s1749_s17 = smov [#allocation2]   ;;  %s54_s16 = int_to_ptr.hbm [resolvable:$true] %s53_s16 }
  0x12   :  { %s31_s18 = sshll.u32 %s1749_s17, 4  ;;  %s1750_s19 = smov [#allocation7]   ;;  %s32_s18 = int_to_ptr.vmem [resolvable:$true] %s31_s18 }
  0x13   :  { %34 = dma.hbm_to_vmem [thread:$0]  %s30_s6, 48, %s32_s18, [#allocation3]  }
  0x14   :  { %s55_s20 = sshll.u32 %s1750_s19, 4  ;;  %s78_s0 = sshll.u32 %s1887_s5, 4  ;;  %s56_s20 = int_to_ptr.vmem [resolvable:$true] %s55_s20  ;;  %s79_s0 = int_to_ptr.hbm [resolvable:$true] %s78_s0 }
  0x15   :  { %58 = dma.hbm_to_vmem [thread:$0]  %s54_s16, 32, %s56_s20, [#allocation6]  }
  0x16   :  { %s104_s24 = sshll.u32 %s1889_s7, 4  ;;  %s1751_s25 = smov [#allocation10]   ;;  %s105_s24 = int_to_ptr.hbm [resolvable:$true] %s104_s24 }
  0x17   :  { %s80_s2 = sshll.u32 %s1751_s25, 4  ;;  %s1752_s3 = smov [#allocation13]   ;;  %s81_s2 = int_to_ptr.vmem [resolvable:$true] %s80_s2 }
  0x18   :  { %86 = dma.hbm_to_vmem [thread:$0]  %s79_s0, 2048, %s81_s2, [#allocation9], %s1746_s26, %s1746_s26, %s1747_s28  }
  0x19   :  { %s106_s27 = sshll.u32 %s1752_s3, 4  ;;  %s134_s5 = sshll.u32 %s1893_s11, 4  ;;  %s107_s27 = int_to_ptr.vmem [resolvable:$true] %s106_s27  ;;  %s135_s5 = int_to_ptr.hbm [resolvable:$true] %s134_s5 }
  0x1a   :  { %112 = dma.hbm_to_vmem [thread:$0]  %s105_s24, 1024, %s107_s27, [#allocation12], %s1746_s26, %s1746_s26, %s1747_s28  }
  0x1b   :  { %s1753_s7 = smov [#allocation16]  }
  0x1c   :  { %s136_s14 = sshll.u32 %s1753_s7, 4  ;;  %s137_s14 = int_to_ptr.vmem [resolvable:$true] %s136_s14 }
  0x1d   :  { %142 = dma.hbm_to_vmem [thread:$0]  %s135_s5, 1024, %s137_s14, [#allocation15], %s1746_s26, %s1746_s26, %s1747_s28  }
  0x1e   :  { %1729 = dma.done.wait [#allocation3], 48  }
  0x1f   :  { %1730 = vsyncadd [#allocation3], 4294967248 }
  0x20   :  { %1731 = dma.done.wait [#allocation6], 2080  }
  0x21   :  { %1732 = vsyncadd [#allocation6], 4294965216 }
  0x22   :  { %1733 = dma.done.wait [#allocation9], 4096  }
  0x23   :  { %1734 = vsyncadd [#allocation9], 4294963200 }
  0x24   :  { %1735 = dma.done.wait [#allocation12], 3072  }
  0x25   :  { %1736 = vsyncadd [#allocation12], 4294964224 }
  0x26   :  { %1737 = dma.done.wait [#allocation15], 2048  }
  0x27   :  { %1738 = vsyncadd [#allocation15], 4294965248  ;;  %v1154_v0 = vld [vmem:[#allocation8 + $0x70] sm:$0xf]  ;;  %v1415_v1 = vld [vmem:[#allocation8 + $0x74] sm:$0xf0] }
  0x28   :  { %v1414_v2 = vld [vmem:[#allocation8 + $0x74] sm:$0xf]  ;;  %v1155_v3 = vor.u32 %v1415_v1, %v1154_v0  ;;  %v1156_v4 = vld [vmem:[#allocation8 + $0x78] sm:$0xf0]  ;;  %v1090_v5 = vld [vmem:[#allocation5 + $0x70] sm:$0xf] }
  0x29   :  { %v1399_v6 = vld [vmem:[#allocation5 + $0x74] sm:$0xf0]  ;;  %v1159_v7 = vor.u32 %v1414_v2, %v1156_v4  ;;  %v1398_v9 = vld [vmem:[#allocation5 + $0x74] sm:$0xf]  ;;  %v1092_v10 = vld [vmem:[#allocation5 + $0x78] sm:$0xf0] }
  0x2a   :  { %v1091_v8 = vor.u32 %v1399_v6, %v1090_v5  ;;  %v1146_v11 = vld [vmem:[#allocation8 + $0x60] sm:$0xf]  ;;  %420 = vmatpush.bf16.msra.mxu2 %v1155_v3  ;;  %v1095_v12 = vor.u32 %v1398_v9, %v1092_v10  ;;  %v1413_v13 = vld [vmem:[#allocation8 + $0x64] sm:$0xf0]  ;;  %v1412_v14 = vld [vmem:[#allocation8 + $0x64] sm:$0xf] }
  0x2b   :  { %v1148_v15 = vld [vmem:[#allocation8 + $0x68] sm:$0xf0]  ;;  %433 = vmatpush.bf16.msra.mxu3 %v1159_v7  ;;  %v1147_v16 = vor.u32 %v1413_v13, %v1146_v11  ;;  %v1082_v18 = vld [vmem:[#allocation5 + $0x60] sm:$0xf]  ;;  %v1397_v19 = vld [vmem:[#allocation5 + $0x64] sm:$0xf0] }
  0x2c   :  { %284 = vmatpush.bf16.msra.mxu0 %v1091_v8  ;;  %v1151_v17 = vor.u32 %v1412_v14, %v1148_v15  ;;  %v1396_v20 = vld [vmem:[#allocation5 + $0x64] sm:$0xf]  ;;  %297 = vmatpush.bf16.msra.mxu1 %v1095_v12  ;;  %v1083_v21 = vor.u32 %v1397_v19, %v1082_v18  ;;  %v1084_v22 = vld [vmem:[#allocation5 + $0x68] sm:$0xf0]  ;;  %v1138_v23 = vld [vmem:[#allocation8 + $0x50] sm:$0xf] }
  0x2d   :  { %v1411_v24 = vld [vmem:[#allocation8 + $0x54] sm:$0xf0]  ;;  %v1087_v25 = vor.u32 %v1396_v20, %v1084_v22  ;;  %v1410_v26 = vld [vmem:[#allocation8 + $0x54] sm:$0xf]  ;;  %v1140_v27 = vld [vmem:[#allocation8 + $0x58] sm:$0xf0] }
  0x2e   :  { %v1074_v28 = vld [vmem:[#allocation5 + $0x50] sm:$0xf]  ;;  %421 = vmatpush.bf16.msra.mxu2 %v1147_v16  ;;  %v1139_v29 = vor.u32 %v1411_v24, %v1138_v23  ;;  %v1395_v30 = vld [vmem:[#allocation5 + $0x54] sm:$0xf0]  ;;  %v1394_v31 = vld [vmem:[#allocation5 + $0x54] sm:$0xf]  ;;  %v1143_v33 = vor.u32 %v1410_v26, %v1140_v27 }
  0x2f   :  { %v1076_v32 = vld [vmem:[#allocation5 + $0x58] sm:$0xf0]  ;;  %434 = vmatpush.bf16.msra.mxu3 %v1151_v17  ;;  %v1075_v34 = vor.u32 %v1395_v30, %v1074_v28  ;;  %v1130_v35 = vld [vmem:[#allocation8 + $0x40] sm:$0xf]  ;;  %v1409_v36 = vld [vmem:[#allocation8 + $0x44] sm:$0xf0] }
  0x30   :  { %285 = vmatpush.bf16.msra.mxu0 %v1083_v21  ;;  %v1408_v37 = vld [vmem:[#allocation8 + $0x44] sm:$0xf]  ;;  %298 = vmatpush.bf16.msra.mxu1 %v1087_v25  ;;  %v1079_v38 = vor.u32 %v1394_v31, %v1076_v32  ;;  %v1132_v39 = vld [vmem:[#allocation8 + $0x48] sm:$0xf0]  ;;  %v1066_v40 = vld [vmem:[#allocation5 + $0x40] sm:$0xf]  ;;  %v1131_v44 = vor.u32 %v1409_v36, %v1130_v35 }
  0x31   :  { %v1393_v41 = vld [vmem:[#allocation5 + $0x44] sm:$0xf0]  ;;  %v1392_v42 = vld [vmem:[#allocation5 + $0x44] sm:$0xf]  ;;  %v1068_v43 = vld [vmem:[#allocation5 + $0x48] sm:$0xf0]  ;;  %v1135_v45 = vor.u32 %v1408_v37, %v1132_v39 }
  0x32   :  { %422 = vmatpush.bf16.msra.mxu2 %v1139_v29  ;;  %v1067_v46 = vor.u32 %v1393_v41, %v1066_v40  ;;  %v1122_v47 = vld [vmem:[#allocation8 + $0x30] sm:$0xf]  ;;  %v1407_v48 = vld [vmem:[#allocation8 + $0x34] sm:$0xf0]  ;;  %v1406_v49 = vld [vmem:[#allocation8 + $0x34] sm:$0xf]  ;;  %v1071_v50 = vor.u32 %v1392_v42, %v1068_v43 }
  0x33   :  { %435 = vmatpush.bf16.msra.mxu3 %v1143_v33  ;;  %v1124_v51 = vld [vmem:[#allocation8 + $0x38] sm:$0xf0]  ;;  %v1058_v52 = vld [vmem:[#allocation5 + $0x30] sm:$0xf]  ;;  %v1391_v53 = vld [vmem:[#allocation5 + $0x34] sm:$0xf0]  ;;  %v1123_v56 = vor.u32 %v1407_v48, %v1122_v47 }
  0x34   :  { %286 = vmatpush.bf16.msra.mxu0 %v1075_v34  ;;  %299 = vmatpush.bf16.msra.mxu1 %v1079_v38  ;;  %v1390_v54 = vld [vmem:[#allocation5 + $0x34] sm:$0xf]  ;;  %v1060_v55 = vld [vmem:[#allocation5 + $0x38] sm:$0xf0]  ;;  %v1127_v57 = vor.u32 %v1406_v49, %v1124_v51  ;;  %v1059_v58 = vor.u32 %v1391_v53, %v1058_v52  ;;  %v1114_v59 = vld [vmem:[#allocation8 + $0x20] sm:$0xf] }
  0x35   :  { %v1405_v60 = vld [vmem:[#allocation8 + $0x24] sm:$0xf0]  ;;  %v1404_v61 = vld [vmem:[#allocation8 + $0x24] sm:$0xf]  ;;  %v1063_v62 = vor.u32 %v1390_v54, %v1060_v55  ;;  %v1116_v63 = vld [vmem:[#allocation8 + $0x28] sm:$0xf0] }
  0x36   :  { %423 = vmatpush.bf16.msra.mxu2 %v1131_v44  ;;  %v1050_v0 = vld [vmem:[#allocation5 + $0x20] sm:$0xf]  ;;  %v1389_v1 = vld [vmem:[#allocation5 + $0x24] sm:$0xf0]  ;;  %v1388_v2 = vld [vmem:[#allocation5 + $0x24] sm:$0xf]  ;;  %v1115_v4 = vor.u32 %v1405_v60, %v1114_v59  ;;  %v1119_v7 = vor.u32 %v1404_v61, %v1116_v63 }
  0x37   :  { %436 = vmatpush.bf16.msra.mxu3 %v1135_v45  ;;  %v1052_v3 = vld [vmem:[#allocation5 + $0x28] sm:$0xf0]  ;;  %v1106_v5 = vld [vmem:[#allocation8 + $0x10] sm:$0xf]  ;;  %v1403_v6 = vld [vmem:[#allocation8 + $0x14] sm:$0xf0]  ;;  %v1051_v8 = vor.u32 %v1389_v1, %v1050_v0 }
  0x38   :  { %287 = vmatpush.bf16.msra.mxu0 %v1067_v46  ;;  %300 = vmatpush.bf16.msra.mxu1 %v1071_v50  ;;  %v1402_v9 = vld [vmem:[#allocation8 + $0x14] sm:$0xf]  ;;  %v1108_v10 = vld [vmem:[#allocation8 + $0x18] sm:$0xf0]  ;;  %v1055_v12 = vor.u32 %v1388_v2, %v1052_v3  ;;  %v1042_v13 = vld [vmem:[#allocation5 + $0x10] sm:$0xf]  ;;  %v1107_v17 = vor.u32 %v1403_v6, %v1106_v5 }
  0x39   :  { %v181_v11 = vld [vmem:[#allocation2] sm:$0x7]  ;;  %v1387_v14 = vld [vmem:[#allocation5 + $0x14] sm:$0xf0]  ;;  %v1386_v15 = vld [vmem:[#allocation5 + $0x14] sm:$0xf]  ;;  %v1111_v18 = vor.u32 %v1402_v9, %v1108_v10 }
  0x3a   :  { %424 = vmatpush.bf16.msra.mxu2 %v1123_v56  ;;  %337 = vst [vmem:[#allocation1] ss:$9 sm:$0xff] %v181_v11  ;;  %v1044_v16 = vld [vmem:[#allocation5 + $0x18] sm:$0xf0]  ;;  %v1043_v19 = vor.u32 %v1387_v14, %v1042_v13  ;;  %v1098_v20 = vld [vmem:[#allocation8] sm:$0xf] }
  0x3b   :  { %437 = vmatpush.bf16.msra.mxu3 %v1127_v57  ;;  %v1401_v21 = vld [vmem:[#allocation8 + $0x4] sm:$0xf0]  ;;  %v1400_v22 = vld [vmem:[#allocation8 + $0x4] sm:$0xf]  ;;  %v1047_v23 = vor.u32 %v1386_v15, %v1044_v16  ;;  %v1100_v24 = vld [vmem:[#allocation8 + $0x8] sm:$0xf0] }
  0x3c   :  { %288 = vmatpush.bf16.msra.mxu0 %v1059_v58  ;;  %301 = vmatpush.bf16.msra.mxu1 %v1063_v62  ;;  %v1034_v25 = vld [vmem:[#allocation5] sm:$0xf]  ;;  %v1385_v26 = vld [vmem:[#allocation5 + $0x4] sm:$0xf0]  ;;  %v1384_v27 = vld [vmem:[#allocation5 + $0x4] sm:$0xf]  ;;  %v1099_v29 = vor.u32 %v1401_v21, %v1098_v20  ;;  %v1103_v30 = vor.u32 %v1400_v22, %v1100_v24 }
  0x3d   :  { %v1036_v28 = vld [vmem:[#allocation5 + $0x8] sm:$0xf0]  ;;  %v1035_v31 = vor.u32 %v1385_v26, %v1034_v25  ;;  %v1439_v34 = vld [vmem:[#allocation11 + $0x38] sm:$0xff]  ;;  %v1438_v37 = vld [vmem:[#allocation11 + $0x30] sm:$0xff]  ;;  %s1754_s16 = smov [#allocation17]   ;;  %s1018_s20 = sshll.u32 %s1895_s13, 4  ;;  %s1019_s20 = int_to_ptr.hbm [resolvable:$true] %s1018_s20 }
  0x3e   :  { %425 = vmatpush.bf16.msra.mxu2 %v1115_v4  ;;  %v1039_v33 = vor.u32 %v1384_v27, %v1036_v28  ;;  %v1431_v35 = vld [vmem:[#allocation10 + $0x78] sm:$0xff]  ;;  %v1430_v39 = vld [vmem:[#allocation10 + $0x70] sm:$0xff]  ;;  %v1437_v41 = vld [vmem:[#allocation11 + $0x28] sm:$0xff]  ;;  %s1016_s17 = sshll.u32 %s1754_s16, 4  ;;  %s1017_s17 = int_to_ptr.vmem [resolvable:$true] %s1016_s17 }
  0x3f   :  { %438 = vmatpush.bf16.msra.mxu3 %v1119_v7  ;;  %v1423_v36 = vld [vmem:[#allocation10 + $0x38] sm:$0xff]  ;;  %v1422_v40 = vld [vmem:[#allocation10 + $0x30] sm:$0xff]  ;;  %v1429_v43 = vld [vmem:[#allocation10 + $0x68] sm:$0xff] }
  0x40   :  { %289 = vmatpush.bf16.msra.mxu0 %v1051_v8  ;;  %302 = vmatpush.bf16.msra.mxu1 %v1055_v12  ;;  %v1447_v38 = vld [vmem:[#allocation11 + $0x78] sm:$0xff]  ;;  %v1446_v42 = vld [vmem:[#allocation11 + $0x70] sm:$0xff]  ;;  %v1421_v44 = vld [vmem:[#allocation10 + $0x28] sm:$0xff] }
  0x41   :  { %v338_v32 = vld [vmem:[#allocation1 + $0x9] sm:$0xff]  ;;  %v1445_v46 = vld [vmem:[#allocation11 + $0x68] sm:$0xff]  ;;  %v1434_v53 = vld [vmem:[#allocation11 + $0x10] sm:$0xff] }
  0x42   :  { %426 = vmatpush.bf16.msra.mxu2 %v1107_v17  ;;  %774 = vst [vmem:[#allocation1] ss:$9 sm:$0xff] %v181_v11  ;;  %v1436_v45 = vld [vmem:[#allocation11 + $0x20] sm:$0xff]  ;;  %v1435_v49 = vld [vmem:[#allocation11 + $0x18] sm:$0xff]  ;;  %v1426_v55 = vld [vmem:[#allocation10 + $0x50] sm:$0xff] }
  0x43   :  { %439 = vmatpush.bf16.msra.mxu3 %v1111_v18  ;;  %v1428_v47 = vld [vmem:[#allocation10 + $0x60] sm:$0xff]  ;;  %v1427_v51 = vld [vmem:[#allocation10 + $0x58] sm:$0xff]  ;;  %v1418_v56 = vld [vmem:[#allocation10 + $0x10] sm:$0xff] }
  0x44   :  { %290 = vmatpush.bf16.msra.mxu0 %v1043_v19  ;;  %303 = vmatpush.bf16.msra.mxu1 %v1047_v23  ;;  %v1420_v48 = vld [vmem:[#allocation10 + $0x20] sm:$0xff]  ;;  %v1419_v52 = vld [vmem:[#allocation10 + $0x18] sm:$0xff]  ;;  %v1433_v57 = vld [vmem:[#allocation11 + $0x8] sm:$0xff] }
  0x45   :  { %v1444_v50 = vld [vmem:[#allocation11 + $0x60] sm:$0xff]  ;;  %v1443_v54 = vld [vmem:[#allocation11 + $0x58] sm:$0xff]  ;;  %v1442_v60 = vld [vmem:[#allocation11 + $0x50] sm:$0xff] }
  0x46   :  { %427 = vmatpush.bf16.msra.mxu2 %v1099_v29  ;;  %v1432_v58 = vld [vmem:[#allocation11] sm:$0xff]  ;;  %v1455_v59 = vld [vmem:[#allocation13 + $0x38] sm:$0xff]  ;;  %v1417_v61 = vld [vmem:[#allocation10 + $0x8] sm:$0xff] }
  0x47   :  { %440 = vmatpush.bf16.msra.mxu3 %v1103_v30  ;;  %v1454_v62 = vld [vmem:[#allocation13 + $0x30] sm:$0xff]  ;;  %v1425_v63 = vld [vmem:[#allocation10 + $0x48] sm:$0xff]  ;;  %v1416_v1 = vld [vmem:[#allocation10] sm:$0xff] }
  0x48   :  { %291 = vmatpush.bf16.msra.mxu0 %v1035_v31  ;;  %304 = vmatpush.bf16.msra.mxu1 %v1039_v33  ;;  %v1441_v0 = vld [vmem:[#allocation11 + $0x48] sm:$0xff]  ;;  %v1424_v3 = vld [vmem:[#allocation10 + $0x40] sm:$0xff]  ;;  %v1451_v6 = vld [vmem:[#allocation13 + $0x18] sm:$0xff] }
  0x49   :  { %428 = vmatmul.bf16.vlgmr.msra.gmra.mxu2 %v338_v32  ;;  %v1453_v2 = vld [vmem:[#allocation13 + $0x28] sm:$0xff]  ;;  %v1440_v4 = vld [vmem:[#allocation11 + $0x40] sm:$0xff]  ;;  %v1450_v7 = vld [vmem:[#allocation13 + $0x10] sm:$0xff] }
  0x4a   :  { %441 = vmatmul.bf16.vlgmr.msra.gmra.mxu3 %v338_v32  ;;  %732 = vmatpush.bf16.msrb.mxu2 %v1423_v36  ;;  %v1452_v5 = vld [vmem:[#allocation13 + $0x20] sm:$0xff]  ;;  %v1449_v8 = vld [vmem:[#allocation13 + $0x8] sm:$0xff]  ;;  %v198_v10 = vld [vmem:[#allocation7] sm:$0x3] }
  0x4b   :  { %745 = vmatpush.bf16.msrb.mxu3 %v1431_v35  ;;  %292 = vmatmul.bf16.vlgmr.msra.gmra.mxu0 %v181_v11  ;;  %v1448_v9 = vld [vmem:[#allocation13] sm:$0xff]  ;;  %v200_v12 = vperm.slane %v198_v10, 0  ;;  %v201_v13 = vperm.slane %v198_v10, 1  ;;  %v1462_v14 = vld [vmem:[#allocation14 + $0x30] sm:$0xff] }
  0x4c   :  { %610 = vmatpush.bf16.msrb.mxu0 %v1439_v34  ;;  %305 = vmatmul.bf16.vlgmr.msra.gmra.mxu1 %v181_v11  ;;  %v1463_v11 = vld [vmem:[#allocation14 + $0x38] sm:$0xff]  ;;  %v330_v15 = vld [vmem:[%s1886_s4] sm:$0x3] }
  0x4d   :  { %623 = vmatpush.bf16.msrb.mxu1 %v1447_v38  ;;  %v332_v20 = vperm.slane %v330_v15, 0  ;;  %v333_v22 = vperm.slane %v330_v15, 1  ;;  %v775_v38 = vld [vmem:[#allocation1 + $0x12] sm:$0xff] }
  0x4e   :  { %733 = vmatpush.bf16.msrb.mxu2 %v1422_v40  ;;  %v1460_v40 = vld [vmem:[#allocation14 + $0x20] sm:$0xff] }
  0x4f   :  { %746 = vmatpush.bf16.msrb.mxu3 %v1430_v39  ;;  %v1461_v39 = vld [vmem:[#allocation14 + $0x28] sm:$0xff] }
  0x50   :  { %611 = vmatpush.bf16.msrb.mxu0 %v1438_v37 }
  0x51   :  { %624 = vmatpush.bf16.msrb.mxu1 %v1446_v42  ;;  %v1458_v42 = vld [vmem:[#allocation14 + $0x10] sm:$0xff] }
  0x52   :  { %734 = vmatpush.bf16.msrb.mxu2 %v1421_v44  ;;  %v1456_v44 = vld [vmem:[#allocation14] sm:$0xff] }
  0x53   :  { %747 = vmatpush.bf16.msrb.mxu3 %v1429_v43  ;;  %v1457_v43 = vld [vmem:[#allocation14 + $0x8] sm:$0xff] }
  0x54   :  { %612 = vmatpush.bf16.msrb.mxu0 %v1437_v41  ;;  %v1459_v41 = vld [vmem:[#allocation14 + $0x18] sm:$0xff] }
  0x55   :  { %625 = vmatpush.bf16.msrb.mxu1 %v1445_v46  ;;  %v1470_v46 = vld [vmem:[#allocation16 + $0x30] sm:$0xff] }
  0x56   :  { %735 = vmatpush.bf16.msrb.mxu2 %v1420_v48 }
  0x57   :  { %748 = vmatpush.bf16.msrb.mxu3 %v1428_v47  ;;  %v1469_v47 = vld [vmem:[#allocation16 + $0x28] sm:$0xff] }
  0x58   :  { %613 = vmatpush.bf16.msrb.mxu0 %v1436_v45  ;;  %v1471_v45 = vld [vmem:[#allocation16 + $0x38] sm:$0xff] }
  0x59   :  { %626 = vmatpush.bf16.msrb.mxu1 %v1444_v50 }
  0x5a   :  { %736 = vmatpush.bf16.msrb.mxu2 %v1419_v52  ;;  %v1468_v52 = vld [vmem:[#allocation16 + $0x20] sm:$0xff] }
  0x5b   :  { %749 = vmatpush.bf16.msrb.mxu3 %v1427_v51 }
  0x5c   :  { %614 = vmatpush.bf16.msrb.mxu0 %v1435_v49 }
  0x5d   :  { %627 = vmatpush.bf16.msrb.mxu1 %v1443_v54  ;;  %v1467_v54 = vld [vmem:[#allocation16 + $0x18] sm:$0xff] }
  0x5e   :  { %737 = vmatpush.bf16.msrb.mxu2 %v1418_v56 }
  0x5f   :  { %750 = vmatpush.bf16.msrb.mxu3 %v1426_v55 }
  0x60   :  { %615 = vmatpush.bf16.msrb.mxu0 %v1434_v53 }
  0x61   :  { %628 = vmatpush.bf16.msrb.mxu1 %v1442_v60  ;;  %v1466_v60 = vld [vmem:[#allocation16 + $0x10] sm:$0xff] }
  0x62   :  { %738 = vmatpush.bf16.msrb.mxu2 %v1417_v61 }
  0x63   :  { %751 = vmatpush.bf16.msrb.mxu3 %v1425_v63 }
  0x64   :  { %616 = vmatpush.bf16.msrb.mxu0 %v1433_v57 }
  0x65   :  { %629 = vmatpush.bf16.msrb.mxu1 %v1441_v0 }
  0x66   :  { %739 = vmatpush.bf16.msrb.mxu2 %v1416_v1 }
  0x67   :  { %752 = vmatpush.bf16.msrb.mxu3 %v1424_v3 }
  0x68   :  { %617 = vmatpush.bf16.msrb.mxu0 %v1432_v58 }
  0x69   :  { %630 = vmatpush.bf16.msrb.mxu1 %v1440_v4 }
  0x6a   :  { %997 = vmatpush.bf16.msra.mxu2 %v1471_v45 }
  0x6c   :  { %825 = vmatpush.bf16.msra.mxu0 %v1455_v59 }
  0x6d   :  { %914 = vmatpush.bf16.msra.mxu1 %v1463_v11 }
  0x6e   :  { %998 = vmatpush.bf16.msra.mxu2 %v1470_v46 }
  0x70   :  { %826 = vmatpush.bf16.msra.mxu0 %v1454_v62  ;;  %v1486_v62 = vld [vmem:[%s1890_s8] ss:$0 sm:$0xff] }
  0x71   :  { %915 = vmatpush.bf16.msra.mxu1 %v1462_v14 }
  0x72   :  { %999 = vmatpush.bf16.msra.mxu2 %v1469_v47 }
  0x74   :  { %827 = vmatpush.bf16.msra.mxu0 %v1453_v2 }
  0x75   :  { %916 = vmatpush.bf16.msra.mxu1 %v1461_v39 }
  0x76   :  { %1000 = vmatpush.bf16.msra.mxu2 %v1468_v52 }
  0x78   :  { %828 = vmatpush.bf16.msra.mxu0 %v1452_v5  ;;  %v1465_v5 = vld [vmem:[#allocation16 + $0x8] sm:$0xff] }
  0x79   :  { %917 = vmatpush.bf16.msra.mxu1 %v1460_v40 }
  0x7a   :  { %1001 = vmatpush.bf16.msra.mxu2 %v1467_v54 }
  0x7c   :  { %829 = vmatpush.bf16.msra.mxu0 %v1451_v6  ;;  %v1464_v6 = vld [vmem:[#allocation16] sm:$0xff] }
  0x7d   :  { %918 = vmatpush.bf16.msra.mxu1 %v1459_v41 }
  0x7e   :  { %1002 = vmatpush.bf16.msra.mxu2 %v1466_v60 }
  0x80   :  { %830 = vmatpush.bf16.msra.mxu0 %v1450_v7  ;;  %v1487_v7 = vld [vmem:[%s1892_s10] ss:$0 sm:$0xff] }
  0x81   :  { %919 = vmatpush.bf16.msra.mxu1 %v1458_v42 }
  0x82   :  { %1003 = vmatpush.bf16.msra.mxu2 %v1465_v5 }
  0x84   :  { %831 = vmatpush.bf16.msra.mxu0 %v1449_v8 }
  0x85   :  { %920 = vmatpush.bf16.msra.mxu1 %v1457_v43 }
  0x86   :  { %1004 = vmatpush.bf16.msra.mxu2 %v1464_v6 }
  0x88   :  { %832 = vmatpush.bf16.msra.mxu0 %v1448_v9 }
  0x89   :  { %921 = vmatpush.bf16.msra.mxu1 %v1456_v44 }
  0xc8   :  { %v293_v16 = vpop.f32.mrf.mxu0 }
  0xc9   :  { %v294_v17 = vadd.f32 %v293_v16, %v200_v12  ;;  %v306_v18 = vpop.f32.mrf.mxu1 }
  0xca   :  { %v307_v19 = vadd.f32 %v306_v18, %v201_v13  ;;  %v1488_v13 = vld [vmem:[%s1894_s12] ss:$0 sm:$0xff] }
  0xcb   :  { %v310_v21 = vmax.f32 %v294_v17, 0.0 }
  0xcc   :  { %v311_v23 = vmax.f32 %v307_v19, 0.0  ;;  %v429_v25 = vpop.f32.mrf.mxu2 }
  0xcd   :  { %v312_v24 = vpack.c.bf16 %v310_v21, %v310_v21  ;;  %v430_v27 = vadd.f32 %v429_v25, %v332_v20  ;;  %v442_v28 = vpop.f32.mrf.mxu3 }
  0xce   :  { %v313_v26 = vpack.c.bf16 %v311_v23, %v311_v23  ;;  %v443_v29 = vadd.f32 %v442_v28, %v333_v22 }
  0xcf   :  { %740 = vmatmul.bf16.vlgmr.msrb.gmra.mxu2 %v312_v24  ;;  %v446_v30 = vmax.f32 %v430_v27, 0.0 }
  0xd0   :  { %753 = vmatmul.bf16.vlgmr.msrb.gmra.mxu3 %v313_v26  ;;  %v295_v31 = vpop.f32.mrf.mxu0  ;;  %v447_v32 = vmax.f32 %v443_v29, 0.0 }
  0xd1   :  { %v308_v33 = vpop.f32.mrf.mxu1  ;;  %v448_v34 = vpack.c.bf16 %v446_v30, %v446_v30 }
  0xd2   :  { %v449_v35 = vpack.c.bf16 %v447_v32, %v447_v32 }
  0xd3   :  { %618 = vmatmul.bf16.vlgmr.msrb.gmra.mxu0 %v448_v34 }
  0xd4   :  { %631 = vmatmul.bf16.vlgmr.msrb.gmra.mxu1 %v449_v35  ;;  %v431_v36 = vpop.f32.mrf.mxu2 }
  0xd5   :  { %v444_v37 = vpop.f32.mrf.mxu3 }
  0xe3   :  { %833 = vmatmul.bf16.vlgmr.msra.gmra.mxu0 %v775_v38 }
 0x150   :  { %v619_v48 = vpop.f32.mrf.mxu0 }
 0x151   :  { %v632_v49 = vpop.f32.mrf.mxu1 }
 0x152   :  { %v741_v50 = vpop.f32.mrf.mxu2  ;;  %v633_v53 = vadd.f32 %v632_v49, %v619_v48 }
 0x153   :  { %v754_v51 = vpop.f32.mrf.mxu3 }
 0x154   :  { %v742_v59 = vadd.f32 %v741_v50, %v633_v53 }
 0x156   :  { %v755_v61 = vadd.f32 %v754_v51, %v742_v59 }
 0x158   :  { %v621_v55 = vpop.f32.mrf.mxu0 }
 0x159   :  { %v634_v56 = vpop.f32.mrf.mxu1 }
 0x15a   :  { %v743_v57 = vpop.f32.mrf.mxu2 }
 0x15b   :  { %v756_v58 = vpop.f32.mrf.mxu3 }
 0x160   :  { %v834_v63 = vpop.f32.mrf.mxu0 }
 0x161   :  { %v838_v0 = vadd.f32 %v834_v63, %v755_v61 }
 0x163   :  { %v843_v1 = vadd.f32 %v1486_v62, %v838_v0 }
 0x165   :  { %v844_v2 = vmax.f32 %v843_v1, 0.0 }
 0x167   :  { %v845_v3 = vpack.c.bf16 %v844_v2, %v844_v2 }
 0x168   :  { %v836_v4 = vpop.f32.mrf.mxu0 }
 0x169   :  { %922 = vmatmul.bf16.vlgmr.msra.gmra.mxu1 %v845_v3 }
 0x1e6   :  { %v923_v8 = vpop.f32.mrf.mxu1 }
 0x1e7   :  { %v924_v9 = vadd.f32 %v1487_v7, %v923_v8 }
 0x1e9   :  { %v927_v10 = vmax.f32 %v924_v9, 0.0 }
 0x1eb   :  { %v928_v11 = vpack.c.bf16 %v927_v10, %v927_v10 }
 0x1ed   :  { %1005 = vmatmul.bf16.vlgmr.msra.gmra.mxu2 %v928_v11 }
 0x1ee   :  { %v925_v12 = vpop.f32.mrf.mxu1 }
 0x270   :  { %v1006_v14 = vpop.f32.mrf.mxu2 }
 0x271   :  { %v1007_v15 = vadd.f32 %v1488_v13, %v1006_v14 }
 0x273   :  { %1010 = vst [vmem:[#allocation17] sm:$0x3] %v1007_v15 }
 0x274   :  { %1021 = dma.vmem_to_hbm [thread:$0]  %s1017_s17, 32, %s1019_s20, [#allocation4]  }
 0x278   :  { %v1008_v16 = vpop.f32.mrf.mxu2 }
 0x279   :  { %1739 = dma.done.wait [#allocation4], 32  }
 0x27a   :  { %1740 = vsyncadd [#allocation4], 4294967264 }
 0x27b   :  { %1026 = vsyncpa [#allocation3], 1 }
 0x27c   :  { %1027 = vsyncpa [#allocation6], 1 }
 0x27d   :  { %1028 = vsyncpa [#allocation9], 1 }
 0x27e   :  { %1029 = vsyncpa [#allocation12], 1 }
 0x27f   :  { %1030 = vsyncpa [#allocation15], 1 }
 0x280   :  { %1031 = vsyncpa [#allocation4], 1 }

</bundles_post_ra>
